<compile_context>
chip_gen: v7x
topology: tpu7x:2x2x1
jax: 0.10.0
libtpu: 0.0.40
codegen_flags: <defaults>
</compile_context>

<pallas_src>
import numpy as np
import jax
import jax.numpy as jnp
from jax import lax
from jax.experimental import pallas as pl
from jax.experimental.pallas import tpu as pltpu

# ----------------------------- static config ------------------------------ #
H = W = 16                 # input spatial size
K = 5                      # conv kernel size
N_LAYERS = 4
SIZES = [16, 12, 8, 12, 16]        # valid spatial size at each stage
CHANS = [3, 6, 16, 6, 3]           # true channel count at each stage
CPADS = [8, 8, 16, 8, 8]           # channels padded so feature width % 128 == 0
FEATS = [c * W for c in CPADS]     # 128, 128, 256, 128, 128
FMAX = max(FEATS)                  # 256
R0 = K - 1                         # top slack rows (kept zero)
ROWS = R0 + H + (K - 1)            # 24 canvas rows (top slack + image + bottom slack)
# per-layer canvas-row offsets of the 5 kh taps (conv: +kh, conv-transpose: -kh)
ROW_OFFS = [tuple(range(K)), tuple(range(K)),
            tuple(-k for k in range(K)), tuple(-k for k in range(K))]


# ------------------------------ Pallas kernel ------------------------------ #
def _autoencoder_kernel(x_ref, w0_ref, w1_ref, w2_ref, w3_ref,
                        b_ref, rm_ref, o_ref, c0, c1):
    """Fused 4-layer conv autoencoder for one image (grid is over batch).

    Activations live in two (ROWS, FMAX) VMEM canvases:
      canvas[R0 + r, c*W + w] = act[c, r, w]; slack rows / unused feature
      columns are kept zero so conv-transpose "padding" reads are free.
    Each layer = bias + sum over 5 row-taps of (16, F_in) @ (F_in, F_out),
    followed by fused ReLU and a row-validity mask.
    """
    wrefs = (w0_ref, w1_ref, w2_ref, w3_ref)

    # establish the zero invariant (slack rows, unused feature columns)
    c0[...] = jnp.zeros_like(c0)
    c1[...] = jnp.zeros_like(c1)

    # place the input image rows in the middle of canvas 0
    c0[R0:R0 + H, 0:FEATS[0]] = x_ref[0]

    src, dst = c0, c1
    for l in range(N_LAYERS):
        fi, fo = FEATS[l], FEATS[l + 1]
        bias = b_ref[l][:, 0:fo]                      # (1, fo), hoisted out of tap loop
        acc = jnp.broadcast_to(bias, (H, fo))
        for j, dr in enumerate(ROW_OFFS[l]):
            xs = src[R0 + dr:R0 + dr + H, 0:fi]       # (16, fi) sublane-offset slice
            acc = acc + jnp.dot(xs, wrefs[l][j],
                                preferred_element_type=jnp.float32)
        # fused ReLU + zero out rows beyond this layer's valid height
        dst[R0:R0 + H, 0:fo] = jnp.maximum(acc, 0.0) * rm_ref[l]
        src, dst = dst, src

    o_ref[0] = src[R0:R0 + H, 0:FEATS[-1]]


def _fused_forward(x_feat, ops):
    """x_feat: (N, H, FEATS[0]) lane-dense row features -> (N, H, FEATS[-1])."""
    n = x_feat.shape[0]
    w0, w1, w2, w3 = ops["w"]
    grid_spec = pltpu.PrefetchScalarGridSpec(
        num_scalar_prefetch=0,
        grid=(n,),
        in_specs=[
            pl.BlockSpec((1, H, FEATS[0]), lambda i: (i, 0, 0)),
            pl.BlockSpec(w0.shape, lambda i: (0, 0, 0)),
            pl.BlockSpec(w1.shape, lambda i: (0, 0, 0)),
            pl.BlockSpec(w2.shape, lambda i: (0, 0, 0)),
            pl.BlockSpec(w3.shape, lambda i: (0, 0, 0)),
            pl.BlockSpec(ops["bias"].shape, lambda i: (0, 0, 0)),
            pl.BlockSpec(ops["rowmask"].shape, lambda i: (0, 0, 0)),
        ],
        out_specs=pl.BlockSpec((1, H, FEATS[-1]), lambda i: (i, 0, 0)),
        scratch_shapes=[pltpu.VMEM((ROWS, FMAX), jnp.float32),
                        pltpu.VMEM((ROWS, FMAX), jnp.float32)],
    )
    return pl.pallas_call(
        _autoencoder_kernel,
        out_shape=jax.ShapeDtypeStruct((n, H, FEATS[-1]), jnp.float32),
        grid_spec=grid_spec,
        compiler_params=pltpu.CompilerParams(
            dimension_semantics=("parallel",),      # lets v7x split batch over 2 TCs
            vmem_limit_bytes=32 * 1024 * 1024,
        ),
    )(x_feat, w0, w1, w2, w3, ops["bias"], ops["rowmask"])


# --------------------------- public forward (NCHW) ------------------------- #
def autoencoder_forward(x_nchw, ops):
    n, c, h, w = x_nchw.shape
    assert (h, w, c) == (H, W, CHANS[0]), (h, w, c)
    # NCHW -> lane-dense (N, H, CPAD*W) row features (layout plumbing only)
    xf = jnp.transpose(x_nchw, (0, 2, 1, 3))                         # (N, H, C, W)
    xf = jnp.pad(xf, ((0, 0), (0, 0), (0, CPADS[0] - c), (0, 0)))
    xf = xf.reshape(n, h, FEATS[0])
    of = _fused_forward(xf, ops)                                     # (N, H, 128)
    out = of.reshape(n, h, CPADS[-1], w)[:, :, :CHANS[-1], :]        # (N, H, 3, W)
    return jnp.transpose(out, (0, 2, 1, 3))                          # NCHW


# ----------------------- one-time operand preparation ---------------------- #
def _conv_row_gemms(w_oihw, w_out_valid, cpad_in, cpad_out):
    """Conv2d (stride 1, valid) as K per-row block-Toeplitz GEMM matrices."""
    wn = np.asarray(w_oihw, np.float32)                 # (Co, Ci, K, K)
    co_n, ci_n = wn.shape[0], wn.shape[1]
    m = np.zeros((K, cpad_in * W, cpad_out * W), np.float32)
    ci_idx = np.arange(ci_n)[:, None] * W
    co_idx = np.arange(co_n)[None, :] * W
    for kh in range(K):
        for kw in range(K):
            for wo in range(w_out_valid):
                wi = wo + kw
                if wi < W:
                    m[kh, ci_idx + wi, co_idx + wo] = wn[:, :, kh, kw].T
    return jnp.asarray(m)


def _convT_row_gemms(w_iohw, w_out_valid, cpad_in, cpad_out):
    """ConvTranspose2d (stride 1, pad 0) as K per-row GEMM matrices."""
    wn = np.asarray(w_iohw, np.float32)                 # (Ci, Co, K, K)
    ci_n, co_n = wn.shape[0], wn.shape[1]
    m = np.zeros((K, cpad_in * W, cpad_out * W), np.float32)
    ci_idx = np.arange(ci_n)[:, None] * W
    co_idx = np.arange(co_n)[None, :] * W
    for kh in range(K):
        for kw in range(K):
            for wo in range(w_out_valid):
                wi = wo - kw
                if wi >= 0:
                    m[kh, ci_idx + wi, co_idx + wo] = wn[:, :, kh, kw]
    return jnp.asarray(m)


def build_kernel_operands(params):
    """Pre-pad / pre-structure weights, biases and row masks once at init."""
    w = [
        _conv_row_gemms(params["w1"], SIZES[1], CPADS[0], CPADS[1]),
        _conv_row_gemms(params["w2"], SIZES[2], CPADS[1], CPADS[2]),
        _convT_row_gemms(params["wt1"], SIZES[3], CPADS[2], CPADS[3]),
        _convT_row_gemms(params["wt2"], SIZES[4], CPADS[3], CPADS[4]),
    ]
    bias = np.zeros((N_LAYERS, 1, FMAX), np.float32)
    for l, b in enumerate([params["b1"], params["b2"], params["bt1"], params["bt2"]]):
        bn = np.asarray(b, np.float32)
        for co in range(bn.shape[0]):
            bias[l, 0, co * W: co * W + SIZES[l + 1]] = bn[co]
    rowmask = np.zeros((N_LAYERS, H, 1), np.float32)
    for l in range(N_LAYERS):
        rowmask[l, :SIZES[l + 1], 0] = 1.0
    return {"w": w, "bias": jnp.asarray(bias), "rowmask": jnp.asarray(rowmask)}


# ------------------------------ parameters --------------------------------- #
def init_params(key):
    """Deterministic synthetic parameters in PyTorch layouts."""
    ks = jax.random.split(key, 8)

    def u(k, shape, fan_in):
        bound = 1.0 / np.sqrt(float(fan_in))
        return jax.random.uniform(k, shape, jnp.float32, -bound, bound)

    return dict(
        w1=u(ks[0], (6, 3, K, K), 3 * K * K),   b1=u(ks[1], (6,), 3 * K * K),
        w2=u(ks[2], (16, 6, K, K), 6 * K * K),  b2=u(ks[3], (16,), 6 * K * K),
        wt1=u(ks[4], (16, 6, K, K), 6 * K * K), bt1=u(ks[5], (6,), 6 * K * K),
        wt2=u(ks[6], (6, 3, K, K), 3 * K * K),  bt2=u(ks[7], (3,), 3 * K * K),
    )


# ----------------------- pure-JAX reference (lax.conv) --------------------- #
def reference_forward(x_nchw, params):
    dn = ("NCHW", "OIHW", "NCHW")
    hi = lax.Precision.HIGHEST

    def conv(x, w, b):
        y = lax.conv_general_dilated(x, w, (1, 1), "VALID",
                                     dimension_numbers=dn, precision=hi)
        return jax.nn.relu(y + b.reshape(1, -1, 1, 1))

    def convT(x, w, b):  # torch ConvTranspose2d weight layout (Ci, Co, K, K)
        xp = jnp.pad(x, ((0, 0), (0, 0), (K - 1, K - 1), (K - 1, K - 1)))
        wf = jnp.transpose(jnp.flip(w, (2, 3)), (1, 0, 2, 3))
        y = lax.conv_general_dilated(xp, wf, (1, 1), "VALID",
                                     dimension_numbers=dn, precision=hi)
        return jax.nn.relu(y + b.reshape(1, -1, 1, 1))

    x = conv(x_nchw, params["w1"], params["b1"])
    x = conv(x, params["w2"], params["b2"])
    x = convT(x, params["wt1"], params["bt1"])
    x = convT(x, params["wt2"], params["bt2"])
    return x


# ---------------------------------- main ----------------------------------- #
if __name__ == "__main__":
    key = jax.random.PRNGKey(0)
    kp, kx = jax.random.split(key)
    params = init_params(kp)
    ops = build_kernel_operands(params)   # one-time weight padding / structuring

    x = jax.random.normal(kx, (2, 3, H, W), jnp.float32)  # NCHW like PyTorch

    fwd = jax.jit(autoencoder_forward)
    out = jax.block_until_ready(fwd(x, ops))

    assert out.shape == (2, 3, H, W), out.shape
    assert out.dtype == jnp.float32

    ref = jax.block_until_ready(reference_forward(x, params))
    err = float(jnp.max(jnp.abs(out - ref)))
    assert err < 3e-2, f"max abs err vs lax.conv reference: {err}"

    print("KERNEL_OK")
</pallas_src>

<mosaic_0001>
module attributes {stable_mosaic.version = 11 : i64} {
  func.func @_autoencoder_kernel(%arg0: i32, %arg1: memref<1x16x128xf32, #tpu.memory_space<vmem>>, %arg2: memref<5x128x128xf32, #tpu.memory_space<vmem>>, %arg3: memref<5x128x256xf32, #tpu.memory_space<vmem>>, %arg4: memref<5x256x128xf32, #tpu.memory_space<vmem>>, %arg5: memref<5x128x128xf32, #tpu.memory_space<vmem>>, %arg6: memref<4x1x256xf32, #tpu.memory_space<vmem>>, %arg7: memref<4x16x1xf32, #tpu.memory_space<vmem>>, %arg8: memref<1x16x128xf32, #tpu.memory_space<vmem>>, %arg9: memref<24x256xf32, #tpu.memory_space<vmem>>, %arg10: memref<24x256xf32, #tpu.memory_space<vmem>>) attributes {dimension_semantics = [#tpu.dimension_semantics<parallel>], iteration_bounds = array<i64: 2>, scalar_prefetch = 0 : i64, scratch_operands = 2 : i64, tpu.core_type = #tpu.core_type<tc>, window_params = [{transform_indices = @transform_0, window_bounds = array<i64: 1, 16, 128>}, {pipeline_mode = #tpu.pipeline_mode<synchronous>, transform_indices = @transform_1, window_bounds = array<i64: 5, 128, 128>}, {pipeline_mode = #tpu.pipeline_mode<synchronous>, transform_indices = @transform_2, window_bounds = array<i64: 5, 128, 256>}, {pipeline_mode = #tpu.pipeline_mode<synchronous>, transform_indices = @transform_3, window_bounds = array<i64: 5, 256, 128>}, {pipeline_mode = #tpu.pipeline_mode<synchronous>, transform_indices = @transform_4, window_bounds = array<i64: 5, 128, 128>}, {pipeline_mode = #tpu.pipeline_mode<synchronous>, transform_indices = @transform_5, window_bounds = array<i64: 4, 1, 256>}, {pipeline_mode = #tpu.pipeline_mode<synchronous>, transform_indices = @transform_6, window_bounds = array<i64: 4, 16, 1>}, {transform_indices = @transform_7, window_bounds = array<i64: 1, 16, 128>}]} {
    %cst = arith.constant 0.000000e+00 : f32
    %0 = vector.broadcast %cst : f32 to vector<24x256xf32>
    %c0 = arith.constant 0 : index
    %c0_0 = arith.constant 0 : index
    %1 = vector.load %arg9[%c0, %c0_0] : memref<24x256xf32, #tpu.memory_space<vmem>>, vector<24x256xf32>
    tpu.vector_store %arg9[%c0, %c0_0], %0 {strides = array<i32>} : memref<24x256xf32, #tpu.memory_space<vmem>>, vector<24x256xf32>,
    %cst_1 = arith.constant 0.000000e+00 : f32
    %2 = vector.broadcast %cst_1 : f32 to vector<24x256xf32>
    %c0_2 = arith.constant 0 : index
    %c0_3 = arith.constant 0 : index
    %3 = vector.load %arg10[%c0_2, %c0_3] : memref<24x256xf32, #tpu.memory_space<vmem>>, vector<24x256xf32>
    tpu.vector_store %arg10[%c0_2, %c0_3], %2 {strides = array<i32>} : memref<24x256xf32, #tpu.memory_space<vmem>>, vector<24x256xf32>,
    %c0_4 = arith.constant 0 : index
    %c0_5 = arith.constant 0 : index
    %c0_6 = arith.constant 0 : index
    %4 = vector.load %arg1[%c0_4, %c0_5, %c0_6] : memref<1x16x128xf32, #tpu.memory_space<vmem>>, vector<1x16x128xf32>
    %5 = vector.shape_cast %4 : vector<1x16x128xf32> to vector<16x128xf32>
    %c4 = arith.constant 4 : index
    %c0_7 = arith.constant 0 : index
    %6 = vector.load %arg9[%c4, %c0_7] : memref<24x256xf32, #tpu.memory_space<vmem>>, vector<16x128xf32>
    tpu.vector_store %arg9[%c4, %c0_7], %5 {strides = array<i32>} : memref<24x256xf32, #tpu.memory_space<vmem>>, vector<16x128xf32>,
    %c0_8 = arith.constant 0 : index
    %c0_9 = arith.constant 0 : index
    %c0_10 = arith.constant 0 : index
    %7 = vector.load %arg6[%c0_8, %c0_9, %c0_10] : memref<4x1x256xf32, #tpu.memory_space<vmem>>, vector<1x1x256xf32>
    %8 = vector.shape_cast %7 : vector<1x1x256xf32> to vector<1x256xf32>
    %9 = vector.extract_strided_slice %8 {offsets = [0, 0], sizes = [1, 128], strides = [1, 1]} : vector<1x256xf32> to vector<1x128xf32>
    %10 = vector.shape_cast %9 : vector<1x128xf32> to vector<1x128xf32>
    %11 = vector.broadcast %10 : vector<1x128xf32> to vector<16x128xf32>
    %c4_11 = arith.constant 4 : index
    %c0_12 = arith.constant 0 : index
    %12 = vector.load %arg9[%c4_11, %c0_12] : memref<24x256xf32, #tpu.memory_space<vmem>>, vector<16x128xf32>
    %c0_13 = arith.constant 0 : index
    %c0_14 = arith.constant 0 : index
    %c0_15 = arith.constant 0 : index
    %13 = vector.load %arg2[%c0_13, %c0_14, %c0_15] : memref<5x128x128xf32, #tpu.memory_space<vmem>>, vector<1x128x128xf32>
    %14 = vector.shape_cast %13 : vector<1x128x128xf32> to vector<128x128xf32>
    %cst_16 = arith.constant dense<0.000000e+00> : vector<16x128xf32>
    %15 = tpu.matmul %12, %14, %cst_16 {dimension_numbers = #tpu.dot_dimension_numbers<[1], [0], [0], [1], [0, 0, 1, 1], [], []>} : vector<16x128xf32>, vector<128x128xf32>, vector<16x128xf32> -> vector<16x128xf32>
    %16 = arith.addf %11, %15 : vector<16x128xf32>
    %c5 = arith.constant 5 : index
    %c0_17 = arith.constant 0 : index
    %17 = vector.load %arg9[%c5, %c0_17] : memref<24x256xf32, #tpu.memory_space<vmem>>, vector<16x128xf32>
    %c1 = arith.constant 1 : index
    %c0_18 = arith.constant 0 : index
    %c0_19 = arith.constant 0 : index
    %18 = vector.load %arg2[%c1, %c0_18, %c0_19] : memref<5x128x128xf32, #tpu.memory_space<vmem>>, vector<1x128x128xf32>
    %19 = vector.shape_cast %18 : vector<1x128x128xf32> to vector<128x128xf32>
    %cst_20 = arith.constant dense<0.000000e+00> : vector<16x128xf32>
    %20 = tpu.matmul %17, %19, %cst_20 {dimension_numbers = #tpu.dot_dimension_numbers<[1], [0], [0], [1], [0, 0, 1, 1], [], []>} : vector<16x128xf32>, vector<128x128xf32>, vector<16x128xf32> -> vector<16x128xf32>
    %21 = arith.addf %16, %20 : vector<16x128xf32>
    %c6 = arith.constant 6 : index
    %c0_21 = arith.constant 0 : index
    %22 = vector.load %arg9[%c6, %c0_21] : memref<24x256xf32, #tpu.memory_space<vmem>>, vector<16x128xf32>
    %c2 = arith.constant 2 : index
    %c0_22 = arith.constant 0 : index
    %c0_23 = arith.constant 0 : index
    %23 = vector.load %arg2[%c2, %c0_22, %c0_23] : memref<5x128x128xf32, #tpu.memory_space<vmem>>, vector<1x128x128xf32>
    %24 = vector.shape_cast %23 : vector<1x128x128xf32> to vector<128x128xf32>
    %cst_24 = arith.constant dense<0.000000e+00> : vector<16x128xf32>
    %25 = tpu.matmul %22, %24, %cst_24 {dimension_numbers = #tpu.dot_dimension_numbers<[1], [0], [0], [1], [0, 0, 1, 1], [], []>} : vector<16x128xf32>, vector<128x128xf32>, vector<16x128xf32> -> vector<16x128xf32>
    %26 = arith.addf %21, %25 : vector<16x128xf32>
    %c7 = arith.constant 7 : index
    %c0_25 = arith.constant 0 : index
    %27 = vector.load %arg9[%c7, %c0_25] : memref<24x256xf32, #tpu.memory_space<vmem>>, vector<16x128xf32>
    %c3 = arith.constant 3 : index
    %c0_26 = arith.constant 0 : index
    %c0_27 = arith.constant 0 : index
    %28 = vector.load %arg2[%c3, %c0_26, %c0_27] : memref<5x128x128xf32, #tpu.memory_space<vmem>>, vector<1x128x128xf32>
    %29 = vector.shape_cast %28 : vector<1x128x128xf32> to vector<128x128xf32>
    %cst_28 = arith.constant dense<0.000000e+00> : vector<16x128xf32>
    %30 = tpu.matmul %27, %29, %cst_28 {dimension_numbers = #tpu.dot_dimension_numbers<[1], [0], [0], [1], [0, 0, 1, 1], [], []>} : vector<16x128xf32>, vector<128x128xf32>, vector<16x128xf32> -> vector<16x128xf32>
    %31 = arith.addf %26, %30 : vector<16x128xf32>
    %c8 = arith.constant 8 : index
    %c0_29 = arith.constant 0 : index
    %32 = vector.load %arg9[%c8, %c0_29] : memref<24x256xf32, #tpu.memory_space<vmem>>, vector<16x128xf32>
    %c4_30 = arith.constant 4 : index
    %c0_31 = arith.constant 0 : index
    %c0_32 = arith.constant 0 : index
    %33 = vector.load %arg2[%c4_30, %c0_31, %c0_32] : memref<5x128x128xf32, #tpu.memory_space<vmem>>, vector<1x128x128xf32>
    %34 = vector.shape_cast %33 : vector<1x128x128xf32> to vector<128x128xf32>
    %cst_33 = arith.constant dense<0.000000e+00> : vector<16x128xf32>
    %35 = tpu.matmul %32, %34, %cst_33 {dimension_numbers = #tpu.dot_dimension_numbers<[1], [0], [0], [1], [0, 0, 1, 1], [], []>} : vector<16x128xf32>, vector<128x128xf32>, vector<16x128xf32> -> vector<16x128xf32>
    %36 = arith.addf %31, %35 : vector<16x128xf32>
    %cst_34 = arith.constant 0.000000e+00 : f32
    %37 = vector.broadcast %cst_34 : f32 to vector<16x128xf32>
    %38 = arith.maximumf %36, %37 : vector<16x128xf32>
    %c0_35 = arith.constant 0 : index
    %c0_36 = arith.constant 0 : index
    %c0_37 = arith.constant 0 : index
    %39 = vector.load %arg7[%c0_35, %c0_36, %c0_37] : memref<4x16x1xf32, #tpu.memory_space<vmem>>, vector<1x16x1xf32>
    %40 = vector.shape_cast %39 : vector<1x16x1xf32> to vector<16x1xf32>
    %41 = vector.broadcast %40 : vector<16x1xf32> to vector<16x128xf32>
    %42 = arith.mulf %38, %41 : vector<16x128xf32>
    %c4_38 = arith.constant 4 : index
    %c0_39 = arith.constant 0 : index
    %43 = vector.load %arg10[%c4_38, %c0_39] : memref<24x256xf32, #tpu.memory_space<vmem>>, vector<16x128xf32>
    tpu.vector_store %arg10[%c4_38, %c0_39], %42 {strides = array<i32>} : memref<24x256xf32, #tpu.memory_space<vmem>>, vector<16x128xf32>,
    %c1_40 = arith.constant 1 : index
    %c0_41 = arith.constant 0 : index
    %c0_42 = arith.constant 0 : index
    %44 = vector.load %arg6[%c1_40, %c0_41, %c0_42] : memref<4x1x256xf32, #tpu.memory_space<vmem>>, vector<1x1x256xf32>
    %45 = vector.shape_cast %44 : vector<1x1x256xf32> to vector<1x256xf32>
    %46 = vector.shape_cast %45 : vector<1x256xf32> to vector<1x256xf32>
    %47 = vector.broadcast %46 : vector<1x256xf32> to vector<16x256xf32>
    %c4_43 = arith.constant 4 : index
    %c0_44 = arith.constant 0 : index
    %48 = vector.load %arg10[%c4_43, %c0_44] : memref<24x256xf32, #tpu.memory_space<vmem>>, vector<16x128xf32>
    %c0_45 = arith.constant 0 : index
    %c0_46 = arith.constant 0 : index
    %c0_47 = arith.constant 0 : index
    %49 = vector.load %arg3[%c0_45, %c0_46, %c0_47] : memref<5x128x256xf32, #tpu.memory_space<vmem>>, vector<1x128x256xf32>
    %50 = vector.shape_cast %49 : vector<1x128x256xf32> to vector<128x256xf32>
    %cst_48 = arith.constant dense<0.000000e+00> : vector<16x256xf32>
    %51 = tpu.matmul %48, %50, %cst_48 {dimension_numbers = #tpu.dot_dimension_numbers<[1], [0], [0], [1], [0, 0, 1, 1], [], []>} : vector<16x128xf32>, vector<128x256xf32>, vector<16x256xf32> -> vector<16x256xf32>
    %52 = arith.addf %47, %51 : vector<16x256xf32>
    %c5_49 = arith.constant 5 : index
    %c0_50 = arith.constant 0 : index
    %53 = vector.load %arg10[%c5_49, %c0_50] : memref<24x256xf32, #tpu.memory_space<vmem>>, vector<16x128xf32>
    %c1_51 = arith.constant 1 : index
    %c0_52 = arith.constant 0 : index
    %c0_53 = arith.constant 0 : index
    %54 = vector.load %arg3[%c1_51, %c0_52, %c0_53] : memref<5x128x256xf32, #tpu.memory_space<vmem>>, vector<1x128x256xf32>
    %55 = vector.shape_cast %54 : vector<1x128x256xf32> to vector<128x256xf32>
    %cst_54 = arith.constant dense<0.000000e+00> : vector<16x256xf32>
    %56 = tpu.matmul %53, %55, %cst_54 {dimension_numbers = #tpu.dot_dimension_numbers<[1], [0], [0], [1], [0, 0, 1, 1], [], []>} : vector<16x128xf32>, vector<128x256xf32>, vector<16x256xf32> -> vector<16x256xf32>
    %57 = arith.addf %52, %56 : vector<16x256xf32>
    %c6_55 = arith.constant 6 : index
    %c0_56 = arith.constant 0 : index
    %58 = vector.load %arg10[%c6_55, %c0_56] : memref<24x256xf32, #tpu.memory_space<vmem>>, vector<16x128xf32>
    %c2_57 = arith.constant 2 : index
    %c0_58 = arith.constant 0 : index
    %c0_59 = arith.constant 0 : index
    %59 = vector.load %arg3[%c2_57, %c0_58, %c0_59] : memref<5x128x256xf32, #tpu.memory_space<vmem>>, vector<1x128x256xf32>
    %60 = vector.shape_cast %59 : vector<1x128x256xf32> to vector<128x256xf32>
    %cst_60 = arith.constant dense<0.000000e+00> : vector<16x256xf32>
    %61 = tpu.matmul %58, %60, %cst_60 {dimension_numbers = #tpu.dot_dimension_numbers<[1], [0], [0], [1], [0, 0, 1, 1], [], []>} : vector<16x128xf32>, vector<128x256xf32>, vector<16x256xf32> -> vector<16x256xf32>
    %62 = arith.addf %57, %61 : vector<16x256xf32>
    %c7_61 = arith.constant 7 : index
    %c0_62 = arith.constant 0 : index
    %63 = vector.load %arg10[%c7_61, %c0_62] : memref<24x256xf32, #tpu.memory_space<vmem>>, vector<16x128xf32>
    %c3_63 = arith.constant 3 : index
    %c0_64 = arith.constant 0 : index
    %c0_65 = arith.constant 0 : index
    %64 = vector.load %arg3[%c3_63, %c0_64, %c0_65] : memref<5x128x256xf32, #tpu.memory_space<vmem>>, vector<1x128x256xf32>
    %65 = vector.shape_cast %64 : vector<1x128x256xf32> to vector<128x256xf32>
    %cst_66 = arith.constant dense<0.000000e+00> : vector<16x256xf32>
    %66 = tpu.matmul %63, %65, %cst_66 {dimension_numbers = #tpu.dot_dimension_numbers<[1], [0], [0], [1], [0, 0, 1, 1], [], []>} : vector<16x128xf32>, vector<128x256xf32>, vector<16x256xf32> -> vector<16x256xf32>
    %67 = arith.addf %62, %66 : vector<16x256xf32>
    %c8_67 = arith.constant 8 : index
    %c0_68 = arith.constant 0 : index
    %68 = vector.load %arg10[%c8_67, %c0_68] : memref<24x256xf32, #tpu.memory_space<vmem>>, vector<16x128xf32>
    %c4_69 = arith.constant 4 : index
    %c0_70 = arith.constant 0 : index
    %c0_71 = arith.constant 0 : index
    %69 = vector.load %arg3[%c4_69, %c0_70, %c0_71] : memref<5x128x256xf32, #tpu.memory_space<vmem>>, vector<1x128x256xf32>
    %70 = vector.shape_cast %69 : vector<1x128x256xf32> to vector<128x256xf32>
    %cst_72 = arith.constant dense<0.000000e+00> : vector<16x256xf32>
    %71 = tpu.matmul %68, %70, %cst_72 {dimension_numbers = #tpu.dot_dimension_numbers<[1], [0], [0], [1], [0, 0, 1, 1], [], []>} : vector<16x128xf32>, vector<128x256xf32>, vector<16x256xf32> -> vector<16x256xf32>
    %72 = arith.addf %67, %71 : vector<16x256xf32>
    %cst_73 = arith.constant 0.000000e+00 : f32
    %73 = vector.broadcast %cst_73 : f32 to vector<16x256xf32>
    %74 = arith.maximumf %72, %73 : vector<16x256xf32>
    %c1_74 = arith.constant 1 : index
    %c0_75 = arith.constant 0 : index
    %c0_76 = arith.constant 0 : index
    %75 = vector.load %arg7[%c1_74, %c0_75, %c0_76] : memref<4x16x1xf32, #tpu.memory_space<vmem>>, vector<1x16x1xf32>
    %76 = vector.shape_cast %75 : vector<1x16x1xf32> to vector<16x1xf32>
    %77 = vector.broadcast %76 : vector<16x1xf32> to vector<16x256xf32>
    %78 = arith.mulf %74, %77 : vector<16x256xf32>
    %c4_77 = arith.constant 4 : index
    %c0_78 = arith.constant 0 : index
    %79 = vector.load %arg9[%c4_77, %c0_78] : memref<24x256xf32, #tpu.memory_space<vmem>>, vector<16x256xf32>
    tpu.vector_store %arg9[%c4_77, %c0_78], %78 {strides = array<i32>} : memref<24x256xf32, #tpu.memory_space<vmem>>, vector<16x256xf32>,
    %c2_79 = arith.constant 2 : index
    %c0_80 = arith.constant 0 : index
    %c0_81 = arith.constant 0 : index
    %80 = vector.load %arg6[%c2_79, %c0_80, %c0_81] : memref<4x1x256xf32, #tpu.memory_space<vmem>>, vector<1x1x256xf32>
    %81 = vector.shape_cast %80 : vector<1x1x256xf32> to vector<1x256xf32>
    %82 = vector.extract_strided_slice %81 {offsets = [0, 0], sizes = [1, 128], strides = [1, 1]} : vector<1x256xf32> to vector<1x128xf32>
    %83 = vector.shape_cast %82 : vector<1x128xf32> to vector<1x128xf32>
    %84 = vector.broadcast %83 : vector<1x128xf32> to vector<16x128xf32>
    %c4_82 = arith.constant 4 : index
    %c0_83 = arith.constant 0 : index
    %85 = vector.load %arg9[%c4_82, %c0_83] : memref<24x256xf32, #tpu.memory_space<vmem>>, vector<16x256xf32>
    %c0_84 = arith.constant 0 : index
    %c0_85 = arith.constant 0 : index
    %c0_86 = arith.constant 0 : index
    %86 = vector.load %arg4[%c0_84, %c0_85, %c0_86] : memref<5x256x128xf32, #tpu.memory_space<vmem>>, vector<1x256x128xf32>
    %87 = vector.shape_cast %86 : vector<1x256x128xf32> to vector<256x128xf32>
    %cst_87 = arith.constant dense<0.000000e+00> : vector<16x128xf32>
    %88 = tpu.matmul %85, %87, %cst_87 {dimension_numbers = #tpu.dot_dimension_numbers<[1], [0], [0], [1], [0, 0, 1, 1], [], []>} : vector<16x256xf32>, vector<256x128xf32>, vector<16x128xf32> -> vector<16x128xf32>
    %89 = arith.addf %84, %88 : vector<16x128xf32>
    %c3_88 = arith.constant 3 : index
    %c0_89 = arith.constant 0 : index
    %90 = vector.load %arg9[%c3_88, %c0_89] : memref<24x256xf32, #tpu.memory_space<vmem>>, vector<16x256xf32>
    %c1_90 = arith.constant 1 : index
    %c0_91 = arith.constant 0 : index
    %c0_92 = arith.constant 0 : index
    %91 = vector.load %arg4[%c1_90, %c0_91, %c0_92] : memref<5x256x128xf32, #tpu.memory_space<vmem>>, vector<1x256x128xf32>
    %92 = vector.shape_cast %91 : vector<1x256x128xf32> to vector<256x128xf32>
    %cst_93 = arith.constant dense<0.000000e+00> : vector<16x128xf32>
    %93 = tpu.matmul %90, %92, %cst_93 {dimension_numbers = #tpu.dot_dimension_numbers<[1], [0], [0], [1], [0, 0, 1, 1], [], []>} : vector<16x256xf32>, vector<256x128xf32>, vector<16x128xf32> -> vector<16x128xf32>
    %94 = arith.addf %89, %93 : vector<16x128xf32>
    %c2_94 = arith.constant 2 : index
    %c0_95 = arith.constant 0 : index
    %95 = vector.load %arg9[%c2_94, %c0_95] : memref<24x256xf32, #tpu.memory_space<vmem>>, vector<16x256xf32>
    %c2_96 = arith.constant 2 : index
    %c0_97 = arith.constant 0 : index
    %c0_98 = arith.constant 0 : index
    %96 = vector.load %arg4[%c2_96, %c0_97, %c0_98] : memref<5x256x128xf32, #tpu.memory_space<vmem>>, vector<1x256x128xf32>
    %97 = vector.shape_cast %96 : vector<1x256x128xf32> to vector<256x128xf32>
    %cst_99 = arith.constant dense<0.000000e+00> : vector<16x128xf32>
    %98 = tpu.matmul %95, %97, %cst_99 {dimension_numbers = #tpu.dot_dimension_numbers<[1], [0], [0], [1], [0, 0, 1, 1], [], []>} : vector<16x256xf32>, vector<256x128xf32>, vector<16x128xf32> -> vector<16x128xf32>
    %99 = arith.addf %94, %98 : vector<16x128xf32>
    %c1_100 = arith.constant 1 : index
    %c0_101 = arith.constant 0 : index
    %100 = vector.load %arg9[%c1_100, %c0_101] : memref<24x256xf32, #tpu.memory_space<vmem>>, vector<16x256xf32>
    %c3_102 = arith.constant 3 : index
    %c0_103 = arith.constant 0 : index
    %c0_104 = arith.constant 0 : index
    %101 = vector.load %arg4[%c3_102, %c0_103, %c0_104] : memref<5x256x128xf32, #tpu.memory_space<vmem>>, vector<1x256x128xf32>
    %102 = vector.shape_cast %101 : vector<1x256x128xf32> to vector<256x128xf32>
    %cst_105 = arith.constant dense<0.000000e+00> : vector<16x128xf32>
    %103 = tpu.matmul %100, %102, %cst_105 {dimension_numbers = #tpu.dot_dimension_numbers<[1], [0], [0], [1], [0, 0, 1, 1], [], []>} : vector<16x256xf32>, vector<256x128xf32>, vector<16x128xf32> -> vector<16x128xf32>
    %104 = arith.addf %99, %103 : vector<16x128xf32>
    %c0_106 = arith.constant 0 : index
    %c0_107 = arith.constant 0 : index
    %105 = vector.load %arg9[%c0_106, %c0_107] : memref<24x256xf32, #tpu.memory_space<vmem>>, vector<16x256xf32>
    %c4_108 = arith.constant 4 : index
    %c0_109 = arith.constant 0 : index
    %c0_110 = arith.constant 0 : index
    %106 = vector.load %arg4[%c4_108, %c0_109, %c0_110] : memref<5x256x128xf32, #tpu.memory_space<vmem>>, vector<1x256x128xf32>
    %107 = vector.shape_cast %106 : vector<1x256x128xf32> to vector<256x128xf32>
    %cst_111 = arith.constant dense<0.000000e+00> : vector<16x128xf32>
    %108 = tpu.matmul %105, %107, %cst_111 {dimension_numbers = #tpu.dot_dimension_numbers<[1], [0], [0], [1], [0, 0, 1, 1], [], []>} : vector<16x256xf32>, vector<256x128xf32>, vector<16x128xf32> -> vector<16x128xf32>
    %109 = arith.addf %104, %108 : vector<16x128xf32>
    %cst_112 = arith.constant 0.000000e+00 : f32
    %110 = vector.broadcast %cst_112 : f32 to vector<16x128xf32>
    %111 = arith.maximumf %109, %110 : vector<16x128xf32>
    %c2_113 = arith.constant 2 : index
    %c0_114 = arith.constant 0 : index
    %c0_115 = arith.constant 0 : index
    %112 = vector.load %arg7[%c2_113, %c0_114, %c0_115] : memref<4x16x1xf32, #tpu.memory_space<vmem>>, vector<1x16x1xf32>
    %113 = vector.shape_cast %112 : vector<1x16x1xf32> to vector<16x1xf32>
    %114 = vector.broadcast %113 : vector<16x1xf32> to vector<16x128xf32>
    %115 = arith.mulf %111, %114 : vector<16x128xf32>
    %c4_116 = arith.constant 4 : index
    %c0_117 = arith.constant 0 : index
    %116 = vector.load %arg10[%c4_116, %c0_117] : memref<24x256xf32, #tpu.memory_space<vmem>>, vector<16x128xf32>
    tpu.vector_store %arg10[%c4_116, %c0_117], %115 {strides = array<i32>} : memref<24x256xf32, #tpu.memory_space<vmem>>, vector<16x128xf32>,
    %c3_118 = arith.constant 3 : index
    %c0_119 = arith.constant 0 : index
    %c0_120 = arith.constant 0 : index
    %117 = vector.load %arg6[%c3_118, %c0_119, %c0_120] : memref<4x1x256xf32, #tpu.memory_space<vmem>>, vector<1x1x256xf32>
    %118 = vector.shape_cast %117 : vector<1x1x256xf32> to vector<1x256xf32>
    %119 = vector.extract_strided_slice %118 {offsets = [0, 0], sizes = [1, 128], strides = [1, 1]} : vector<1x256xf32> to vector<1x128xf32>
    %120 = vector.shape_cast %119 : vector<1x128xf32> to vector<1x128xf32>
    %121 = vector.broadcast %120 : vector<1x128xf32> to vector<16x128xf32>
    %c4_121 = arith.constant 4 : index
    %c0_122 = arith.constant 0 : index
    %122 = vector.load %arg10[%c4_121, %c0_122] : memref<24x256xf32, #tpu.memory_space<vmem>>, vector<16x128xf32>
    %c0_123 = arith.constant 0 : index
    %c0_124 = arith.constant 0 : index
    %c0_125 = arith.constant 0 : index
    %123 = vector.load %arg5[%c0_123, %c0_124, %c0_125] : memref<5x128x128xf32, #tpu.memory_space<vmem>>, vector<1x128x128xf32>
    %124 = vector.shape_cast %123 : vector<1x128x128xf32> to vector<128x128xf32>
    %cst_126 = arith.constant dense<0.000000e+00> : vector<16x128xf32>
    %125 = tpu.matmul %122, %124, %cst_126 {dimension_numbers = #tpu.dot_dimension_numbers<[1], [0], [0], [1], [0, 0, 1, 1], [], []>} : vector<16x128xf32>, vector<128x128xf32>, vector<16x128xf32> -> vector<16x128xf32>
    %126 = arith.addf %121, %125 : vector<16x128xf32>
    %c3_127 = arith.constant 3 : index
    %c0_128 = arith.constant 0 : index
    %127 = vector.load %arg10[%c3_127, %c0_128] : memref<24x256xf32, #tpu.memory_space<vmem>>, vector<16x128xf32>
    %c1_129 = arith.constant 1 : index
    %c0_130 = arith.constant 0 : index
    %c0_131 = arith.constant 0 : index
    %128 = vector.load %arg5[%c1_129, %c0_130, %c0_131] : memref<5x128x128xf32, #tpu.memory_space<vmem>>, vector<1x128x128xf32>
    %129 = vector.shape_cast %128 : vector<1x128x128xf32> to vector<128x128xf32>
    %cst_132 = arith.constant dense<0.000000e+00> : vector<16x128xf32>
    %130 = tpu.matmul %127, %129, %cst_132 {dimension_numbers = #tpu.dot_dimension_numbers<[1], [0], [0], [1], [0, 0, 1, 1], [], []>} : vector<16x128xf32>, vector<128x128xf32>, vector<16x128xf32> -> vector<16x128xf32>
    %131 = arith.addf %126, %130 : vector<16x128xf32>
    %c2_133 = arith.constant 2 : index
    %c0_134 = arith.constant 0 : index
    %132 = vector.load %arg10[%c2_133, %c0_134] : memref<24x256xf32, #tpu.memory_space<vmem>>, vector<16x128xf32>
    %c2_135 = arith.constant 2 : index
    %c0_136 = arith.constant 0 : index
    %c0_137 = arith.constant 0 : index
    %133 = vector.load %arg5[%c2_135, %c0_136, %c0_137] : memref<5x128x128xf32, #tpu.memory_space<vmem>>, vector<1x128x128xf32>
    %134 = vector.shape_cast %133 : vector<1x128x128xf32> to vector<128x128xf32>
    %cst_138 = arith.constant dense<0.000000e+00> : vector<16x128xf32>
    %135 = tpu.matmul %132, %134, %cst_138 {dimension_numbers = #tpu.dot_dimension_numbers<[1], [0], [0], [1], [0, 0, 1, 1], [], []>} : vector<16x128xf32>, vector<128x128xf32>, vector<16x128xf32> -> vector<16x128xf32>
    %136 = arith.addf %131, %135 : vector<16x128xf32>
    %c1_139 = arith.constant 1 : index
    %c0_140 = arith.constant 0 : index
    %137 = vector.load %arg10[%c1_139, %c0_140] : memref<24x256xf32, #tpu.memory_space<vmem>>, vector<16x128xf32>
    %c3_141 = arith.constant 3 : index
    %c0_142 = arith.constant 0 : index
    %c0_143 = arith.constant 0 : index
    %138 = vector.load %arg5[%c3_141, %c0_142, %c0_143] : memref<5x128x128xf32, #tpu.memory_space<vmem>>, vector<1x128x128xf32>
    %139 = vector.shape_cast %138 : vector<1x128x128xf32> to vector<128x128xf32>
    %cst_144 = arith.constant dense<0.000000e+00> : vector<16x128xf32>
    %140 = tpu.matmul %137, %139, %cst_144 {dimension_numbers = #tpu.dot_dimension_numbers<[1], [0], [0], [1], [0, 0, 1, 1], [], []>} : vector<16x128xf32>, vector<128x128xf32>, vector<16x128xf32> -> vector<16x128xf32>
    %141 = arith.addf %136, %140 : vector<16x128xf32>
    %c0_145 = arith.constant 0 : index
    %c0_146 = arith.constant 0 : index
    %142 = vector.load %arg10[%c0_145, %c0_146] : memref<24x256xf32, #tpu.memory_space<vmem>>, vector<16x128xf32>
    %c4_147 = arith.constant 4 : index
    %c0_148 = arith.constant 0 : index
    %c0_149 = arith.constant 0 : index
    %143 = vector.load %arg5[%c4_147, %c0_148, %c0_149] : memref<5x128x128xf32, #tpu.memory_space<vmem>>, vector<1x128x128xf32>
    %144 = vector.shape_cast %143 : vector<1x128x128xf32> to vector<128x128xf32>
    %cst_150 = arith.constant dense<0.000000e+00> : vector<16x128xf32>
    %145 = tpu.matmul %142, %144, %cst_150 {dimension_numbers = #tpu.dot_dimension_numbers<[1], [0], [0], [1], [0, 0, 1, 1], [], []>} : vector<16x128xf32>, vector<128x128xf32>, vector<16x128xf32> -> vector<16x128xf32>
    %146 = arith.addf %141, %145 : vector<16x128xf32>
    %cst_151 = arith.constant 0.000000e+00 : f32
    %147 = vector.broadcast %cst_151 : f32 to vector<16x128xf32>
    %148 = arith.maximumf %146, %147 : vector<16x128xf32>
    %c3_152 = arith.constant 3 : index
    %c0_153 = arith.constant 0 : index
    %c0_154 = arith.constant 0 : index
    %149 = vector.load %arg7[%c3_152, %c0_153, %c0_154] : memref<4x16x1xf32, #tpu.memory_space<vmem>>, vector<1x16x1xf32>
    %150 = vector.shape_cast %149 : vector<1x16x1xf32> to vector<16x1xf32>
    %151 = vector.broadcast %150 : vector<16x1xf32> to vector<16x128xf32>
    %152 = arith.mulf %148, %151 : vector<16x128xf32>
    %c4_155 = arith.constant 4 : index
    %c0_156 = arith.constant 0 : index
    %153 = vector.load %arg9[%c4_155, %c0_156] : memref<24x256xf32, #tpu.memory_space<vmem>>, vector<16x128xf32>
    tpu.vector_store %arg9[%c4_155, %c0_156], %152 {strides = array<i32>} : memref<24x256xf32, #tpu.memory_space<vmem>>, vector<16x128xf32>,
    %c4_157 = arith.constant 4 : index
    %c0_158 = arith.constant 0 : index
    %154 = vector.load %arg9[%c4_157, %c0_158] : memref<24x256xf32, #tpu.memory_space<vmem>>, vector<16x128xf32>
    %c0_159 = arith.constant 0 : index
    %c0_160 = arith.constant 0 : index
    %c0_161 = arith.constant 0 : index
    %155 = vector.load %arg8[%c0_159, %c0_160, %c0_161] : memref<1x16x128xf32, #tpu.memory_space<vmem>>, vector<1x16x128xf32>
    %156 = vector.shape_cast %155 : vector<1x16x128xf32> to vector<16x128xf32>
    %157 = vector.shape_cast %154 : vector<16x128xf32> to vector<1x16x128xf32>
    tpu.vector_store %arg8[%c0_159, %c0_160, %c0_161], %157 {strides = array<i32>} : memref<1x16x128xf32, #tpu.memory_space<vmem>>, vector<1x16x128xf32>,
    return
  }
  func.func @transform_0(%arg0: i32) -> (i32, i32, i32) {
    %c0_i32 = arith.constant 0 : i32
    %c0_i32_0 = arith.constant 0 : i32
    %c0_i32_1 = arith.constant 0 : i32
    return %arg0, %c0_i32, %c0_i32_0 : i32, i32, i32
  }
  func.func @transform_1(%arg0: i32) -> (i32, i32, i32) {
    %c0_i32 = arith.constant 0 : i32
    %c0_i32_0 = arith.constant 0 : i32
    %c0_i32_1 = arith.constant 0 : i32
    %c0_i32_2 = arith.constant 0 : i32
    return %c0_i32, %c0_i32_0, %c0_i32_1 : i32, i32, i32
  }
  func.func @transform_2(%arg0: i32) -> (i32, i32, i32) {
    %c0_i32 = arith.constant 0 : i32
    %c0_i32_0 = arith.constant 0 : i32
    %c0_i32_1 = arith.constant 0 : i32
    %c0_i32_2 = arith.constant 0 : i32
    return %c0_i32, %c0_i32_0, %c0_i32_1 : i32, i32, i32
  }
  func.func @transform_3(%arg0: i32) -> (i32, i32, i32) {
    %c0_i32 = arith.constant 0 : i32
    %c0_i32_0 = arith.constant 0 : i32
    %c0_i32_1 = arith.constant 0 : i32
    %c0_i32_2 = arith.constant 0 : i32
    return %c0_i32, %c0_i32_0, %c0_i32_1 : i32, i32, i32
  }
  func.func @transform_4(%arg0: i32) -> (i32, i32, i32) {
    %c0_i32 = arith.constant 0 : i32
    %c0_i32_0 = arith.constant 0 : i32
    %c0_i32_1 = arith.constant 0 : i32
    %c0_i32_2 = arith.constant 0 : i32
    return %c0_i32, %c0_i32_0, %c0_i32_1 : i32, i32, i32
  }
  func.func @transform_5(%arg0: i32) -> (i32, i32, i32) {
    %c0_i32 = arith.constant 0 : i32
    %c0_i32_0 = arith.constant 0 : i32
    %c0_i32_1 = arith.constant 0 : i32
    %c0_i32_2 = arith.constant 0 : i32
    return %c0_i32, %c0_i32_0, %c0_i32_1 : i32, i32, i32
  }
  func.func @transform_6(%arg0: i32) -> (i32, i32, i32) {
    %c0_i32 = arith.constant 0 : i32
    %c0_i32_0 = arith.constant 0 : i32
    %c0_i32_1 = arith.constant 0 : i32
    %c0_i32_2 = arith.constant 0 : i32
    return %c0_i32, %c0_i32_0, %c0_i32_1 : i32, i32, i32
  }
  func.func @transform_7(%arg0: i32) -> (i32, i32, i32) {
    %c0_i32 = arith.constant 0 : i32
    %c0_i32_0 = arith.constant 0 : i32
    %c0_i32_1 = arith.constant 0 : i32
    return %arg0, %c0_i32, %c0_i32_0 : i32, i32, i32
  }
}

</mosaic_0001>

<bundles_post_ra>
// kernel: autoencoder_forward.1
= control target key start
LH: loop header
LB: loop body
LE: loop exit
PB: predicated region body
PF: predicated region fallthrough
CT: control target
= control target key end

     0   :  { %12 = vsyncpa [#allocation5], 0  ;;  %s5146_s0 = inlined_call_operand.vmem [shape: f32[2,16,128], index: 0, kind: input, shape index: {}]   ;;  %s5147_s1 = inlined_call_operand.vmem [shape: f32[5,128,128], index: 1, kind: input, shape index: {}]   ;;  %s5148_s2 = inlined_call_operand.hbm [shape: f32[5,128,256], index: 2, kind: input, shape index: {}]   ;;  %s5149_s3 = inlined_call_operand.hbm [shape: f32[5,256,128], index: 3, kind: input, shape index: {}]   ;;  %s5150_s4 = inlined_call_operand.hbm [shape: f32[5,128,128], index: 4, kind: input, shape index: {}]   ;;  %s5151_s5 = inlined_call_operand.vmem [shape: f32[4,1,256], index: 5, kind: input, shape index: {}]   ;;  %s5152_s6 = inlined_call_operand.vmem [shape: f32[4,16,1], index: 6, kind: input, shape index: {}]   ;;  %s5153_s7 = inlined_call_operand.vmem [shape: f32[2,16,128], index: 7, kind: output, shape index: {}]  }
   0x1   :  { %13 = vsyncpa [#allocation7], 0  ;;  %s4592_s24 = smov 0  }
   0x2 LB: > { %s4543_s25 = smov [#allocation6]   ;;  %s4598_s27 = sadd.s32 4294967295, %s4541_s24   ;;  %s4541_s24 = sphi %s4592_s24, %s19_s24  }
   0x3   : > { %s230_s26 = sshll.u32 %s4543_s25, 4  ;;  %p2905_p0 = scmp.ge.s32.totalorder %s4541_s24, 1  ;;  %s4607_s26 = int_to_ptr.vmem [resolvable:$true] %s230_s26 }
   0x4   : > { %p202_p1 = scmp.lt.s32.totalorder %s4541_s24, 3  ;;  %p5154_p2 = scmp.eq.s32.totalorder %s4598_s27, 0 }
   0x5   : > { %s4544_s29 = smov [#allocation4]   ;;  %s4545_s9 = smov [#allocation8]  }
   0x6   : > { %p4603_p3 = pnand %p2905_p0, %p202_p1  ;;  %s217_s30 = sshll.u32 %s4544_s29, 4  ;;  %s4611_s30 = int_to_ptr.vmem [resolvable:$true] %s217_s30 }
   0x7   : > { %s4619_s10 = sshll.u32 %s4545_s9, 4  ;;  %s4443_s13 = scalar_lea.hbm %s5149_s3, 20480  ;;  %s244_s10 = int_to_ptr.vmem [resolvable:$true] %s4619_s10 }
   0x8   : > { %s5156_s28 = scalar_select %p4603_p3, 1, 0 }
   0x9   : > { %p4407_p4 = pneg %p4603_p3  ;;  %p4444_p6 = scmp.ne.s32.totalorder %s5149_s3, %s4443_s13 }
   0xa   : > { %p4450_p10 = scmp.lt.u32.totalorder %s4443_s13, %s5149_s3 }
   0xb   : > { %p4615_p5 = pnand %p5154_p2, %p4407_p4 }
   0xd   : > { %p4629_p7 = pneg %p4615_p5 }
   0xf   : > { %p4446_p8 = pnand %p4629_p7, %p4444_p6 }
  0x11   : > { %p4447_p9 = pneg %p4446_p8 }
  0x13   : > { %p4452_p11 = pnand %p4450_p10, %p4447_p9 }
  0x15   : > { %4455 = shalt.err (!%p4452_p11)
}
  0x16   : > { %s4456_s19 = scalar_lea.vmem %s4607_s26, 20480  ;;  %p4464_p1 = scmp.lt.s32.totalorder %s4607_s26, %s4607_s26 }
  0x17   : > { %p4457_p12 = scmp.ne.s32.totalorder %s4607_s26, %s4456_s19  ;;  %p4465_p4 = scmp.lt.s32.totalorder %s4456_s19, %s4456_s19 }
  0x19   : > { %p4459_p13 = pnand %p4457_p12, %p4629_p7  ;;  %p4466_p6 = por %p4465_p4, %p4464_p1 }
  0x1b   : > { %p4460_p0 = pneg %p4459_p13 }
  0x1d   : > { %p4467_p8 = pnand %p4466_p6, %p4460_p0 }
  0x1f   : > { %4470 = shalt.err (!%p4467_p8)
}
  0x20   : > { %s4546_s20 = smov 128   ;;  %s4547_s21 = smov 8  }
  0x21   : > { %4413 = dma.hbm_to_vmem [thread:$0]  (!%p4615_p5), %s5149_s3, 20480, %s4607_s26, [#allocation7], %s4546_s20, %s4546_s20, %s4547_s21  }
  0x22   : > { %s4471_s9 = scalar_lea.hbm %s5148_s2, 20480 }
  0x23   : > { %p4472_p9 = scmp.ne.s32.totalorder %s5148_s2, %s4471_s9  ;;  %p4478_p12 = scmp.lt.u32.totalorder %s4471_s9, %s5148_s2 }
  0x25   : > { %p4474_p10 = pnand %p4472_p9, %p4629_p7 }
  0x27   : > { %p4475_p11 = pneg %p4474_p10 }
  0x29   : > { %p4480_p13 = pnand %p4478_p12, %p4475_p11 }
  0x2b   : > { %4483 = shalt.err (!%p4480_p13)
}
  0x2c   : > { %s4484_s26 = scalar_lea.vmem %s4611_s30, 20480  ;;  %p4492_p6 = scmp.lt.s32.totalorder %s4611_s30, %s4611_s30 }
  0x2d   : > { %p4485_p0 = scmp.ne.s32.totalorder %s4611_s30, %s4484_s26  ;;  %p4493_p8 = scmp.lt.s32.totalorder %s4484_s26, %s4484_s26 }
  0x2f   : > { %p4487_p1 = pnand %p4485_p0, %p4629_p7  ;;  %p4494_p9 = por %p4493_p8, %p4492_p6 }
  0x31   : > { %p4488_p4 = pneg %p4487_p1 }
  0x33   : > { %p4495_p10 = pnand %p4494_p9, %p4488_p4 }
  0x35   : > { %4498 = shalt.err (!%p4495_p10)
}
  0x36   : > { %s4548_s15 = smov 256   ;;  %s4549_s17 = smov 16  }
  0x37   : > { %4410 = dma.hbm_to_vmem [thread:$0]  (!%p4615_p5), %s5148_s2, 20480, %s4611_s30, [#allocation5], %s4548_s15, %s4548_s15, %s4549_s17  }
  0x38   : > { %s4499_s25 = scalar_lea.hbm %s5150_s4, 10240 }
  0x39   : > { %p4500_p11 = scmp.ne.s32.totalorder %s5150_s4, %s4499_s25  ;;  %p4506_p0 = scmp.lt.u32.totalorder %s4499_s25, %s5150_s4 }
  0x3b   : > { %p4502_p12 = pnand %p4500_p11, %p4629_p7 }
  0x3d   : > { %p4503_p13 = pneg %p4502_p12 }
  0x3f   : > { %p4508_p1 = pnand %p4506_p0, %p4503_p13 }
  0x41   : > { %4511 = shalt.err (!%p4508_p1)
}
  0x42   : > { %s4512_s13 = scalar_lea.vmem %s244_s10, 10240  ;;  %p4520_p9 = scmp.lt.s32.totalorder %s244_s10, %s244_s10 }
  0x43   : > { %p4513_p4 = scmp.ne.s32.totalorder %s244_s10, %s4512_s13  ;;  %p4521_p10 = scmp.lt.s32.totalorder %s4512_s13, %s4512_s13 }
  0x45   : > { %p4515_p6 = pnand %p4513_p4, %p4629_p7  ;;  %p4522_p2 = por %p4521_p10, %p4520_p9 }
  0x47   : > { %p4516_p8 = pneg %p4515_p6 }
  0x49   : > { %p4523_p3 = pnand %p4522_p2, %p4516_p8 }
  0x4b   : > { %4526 = shalt.err (!%p4523_p3)
}
  0x4c   : > { %4416 = dma.hbm_to_vmem [thread:$0]  (!%p4615_p5), %s5150_s4, 10240, %s244_s10, [#allocation7], %s4546_s20, %s4546_s20, %s4547_s21  }
  0x4d   : > { %p5159_p11 = scmp.ne.s32.totalorder %s5156_s28, 0 }
  0x4e   : > { %p5160_p7 = scmp.eq.s32.totalorder (!%p5159_p11), %s4598_s27, 0 }
  0x4f   : > { %273 = sbr.rel (%p5159_p11) target bundleno = 1445 (0x5a5), region = 48 }
  0x56   : > { %4532 = dma.done.wait (%p5160_p7), [#allocation5], 20480   ;;  %p5161_p12 = pmov %p5160_p7 }
  0x57   : > { %p5162_p2 = pmov %p5160_p7 }
  0x58   : > { %4534 = vsyncadd (%p5161_p12), [#allocation5], 4294946816 }
  0x59   : > { %4536 = dma.done.wait (%p5162_p2), [#allocation7], 30720   ;;  %p5163_p3 = pmov %p5162_p2 }
  0x5a   : > { %p313_p13 = scmp.lt.s32.totalorder %s4598_s27, 1  ;;  %v4550_v0 = vmov 0.0   ;;  %v359_v1 = vld [vmem:[%s5147_s1] sm:$0xff]  ;;  %v360_v2 = vld [vmem:[%s5147_s1 + $0x8] sm:$0xff]  ;;  %v361_v3 = vld [vmem:[%s5147_s1 + $0x10] sm:$0xff]  ;;  %vm339_vm0 = vcmask 1043456  }
  0x5b   : > { %4538 = vsyncadd (%p5163_p3), [#allocation7], 4294936576  ;;  %323 = vst [vmem:[#allocation2] sm:$0xff] %v4550_v0  ;;  %1149 = vmatprep.mubr.f32.mxu1 %v4550_v0  ;;  %v3715_v4 = vpack.c.bf16 %v360_v2, %v359_v1  ;;  %v362_v5 = vld [vmem:[%s5147_s1 + $0x18] sm:$0xff]  ;;  %v363_v7 = vld [vmem:[%s5147_s1 + $0x20] sm:$0xff]  ;;  %vm483_vm1 = vcmask 1042432  }
  0x5c   : > { %330 = vst [vmem:[#allocation3 + $0x8] sm:$0xff] %v4550_v0  ;;  %324 = vst [vmem:[#allocation2 + $0x8] sm:$0xff] %v4550_v0  ;;  %s5165_s27 = smov (!%p313_p13, %s4598_s27), 1  ;;  %v3719_v6 = vpack.c.bf16 %v362_v5, %v361_v3  ;;  %v364_v8 = vld [vmem:[%s5147_s1 + $0x28] sm:$0xff]  ;;  %v365_v12 = vld [vmem:[%s5147_s1 + $0x30] sm:$0xff]  ;;  %v4551_v53 = vmov 0  }
  0x5d   : > { %327 = vst [vmem:[#allocation2 + $0x20] sm:$0xff] %v4550_v0  ;;  %328 = vst [vmem:[#allocation2 + $0x28] sm:$0xff] %v4550_v0  ;;  %s2993_s28 = sshll.u32 %s5165_s27, 4  ;;  %3716 = vmatprep.subr.bf16.mxu0 %v3715_v4  ;;  %v3723_v9 = vpack.c.bf16 %v364_v8, %v363_v7  ;;  %v366_v13 = vld [vmem:[%s5147_s1 + $0x38] sm:$0xff]  ;;  %v367_v17 = vld [vmem:[%s5147_s1 + $0x40] sm:$0xff]  ;;  %4440 = vset.pattern.permute.xlu0 %v4551_v53  ;;  %vm589_vm2 = vcmask 1041408  }
  0x5e   : > { %329 = vst [vmem:[#allocation3] sm:$0xff] %v4550_v0  ;;  %333 = vst [vmem:[#allocation3 + $0x20] sm:$0xff] %v4550_v0  ;;  %s317_s9 = scalar_lea.vmem %s5146_s0, %s2993_s28  ;;  %3718 = vmatpush3.bf16.msra.mxu0 %v3715_v4  ;;  %v3727_v16 = vpack.c.bf16 %v366_v13, %v365_v12  ;;  %v368_v18 = vld [vmem:[%s5147_s1 + $0x48] sm:$0xff]  ;;  %v369_v21 = vld [vmem:[%s5147_s1 + $0x50] sm:$0xff]  ;;  %4441 = vset.pattern.permute.xlu1 %v4551_v53  ;;  %vm695_vm3 = vcmask 1040384   ;;  %vm1758_vm4 = vcmask 1044480   ;;  %s322_s19 = scalar_lea.vmem %s5153_s7, %s2993_s28 }
  0x5f   : > { %3720 = vmatprep.subr.bf16.mxu0 %v3719_v6  ;;  %v335_v10 = vld [vmem:[%s317_s9] sm:$0xff]  ;;  %v336_v11 = vld [vmem:[%s317_s9 + $0x8] sm:$0xff]  ;;  %v3731_v20 = vpack.c.bf16 %v368_v18, %v367_v17  ;;  %v370_v22 = vld [vmem:[%s5147_s1 + $0x58] sm:$0xff]  ;;  %vm1891_vm5 = vcmask 1045504   ;;  %vm2024_vm6 = vcmask 1046528  }
  0x60   : > { %v340_v14 = vrot.slane %v335_v10, 4  ;;  %v341_v15 = vrot.slane %v336_v11, 4  ;;  %v3735_v26 = vpack.c.bf16 %v370_v22, %v369_v21  ;;  %v371_v27 = vld [vmem:[%s5147_s1 + $0x60] sm:$0xff]  ;;  %v372_v28 = vld [vmem:[%s5147_s1 + $0x68] sm:$0xff]  ;;  %v373_v31 = vld [vmem:[%s5147_s1 + $0x70] sm:$0xff] }
  0x61   : > { %v3739_v30 = vpack.c.bf16 %v372_v28, %v371_v27  ;;  %v374_v32 = vld [vmem:[%s5147_s1 + $0x78] sm:$0xff]  ;;  %v2918_v35 = vld [vmem:[%s5147_s1 + $0x80] sm:$0xff]  ;;  %v2919_v36 = vld [vmem:[%s5147_s1 + $0x88] sm:$0xff] }
  0x62   : > { %3722 = vmatpush3.bf16.msra.mxu0 %v3719_v6  ;;  %346 = vst [vmem:[#allocation2] sm:$0xf0] %v340_v14  ;;  %348 = vst [vmem:[#allocation2 + $0x20] sm:$0xf] %v341_v15  ;;  %v4757_v19 = vsel %vm339_vm0, %v340_v14, %v341_v15  ;;  %v3743_v33 = vpack.c.bf16 %v374_v32, %v373_v31  ;;  %v3747_v39 = vpack.c.bf16 %v2919_v36, %v2918_v35  ;;  %v2920_v42 = vld [vmem:[%s5147_s1 + $0x90] sm:$0xff]  ;;  %v2921_v43 = vld [vmem:[%s5147_s1 + $0x98] sm:$0xff] }
  0x63   : > { %3724 = vmatprep.subr.bf16.mxu0 %v3723_v9  ;;  %v379_v23 = vrot.slane %v4757_v19, 4  ;;  %v485_v41 = vrot.slane %v4757_v19, 5  ;;  %v3751_v45 = vpack.c.bf16 %v2921_v43, %v2920_v42  ;;  %v2922_v47 = vld [vmem:[%s5147_s1 + $0xa0] sm:$0xff]  ;;  %v2923_v48 = vld [vmem:[%s5147_s1 + $0xa8] sm:$0xff]  ;;  %v1047_v51 = vld [vmem:[#allocation4 + $0x118] sm:$0xff] }
  0x64   : > { %v877_v49 = vld [vmem:[%s5152_s6] sm:$0xff]  ;;  %v1045_v50 = vld [vmem:[#allocation4 + $0x108] sm:$0xff]  ;;  %v3755_v52 = vpack.c.bf16 %v2923_v48, %v2922_v47  ;;  %v2924_v56 = vld [vmem:[%s5147_s1 + $0xb0] sm:$0xff] }
  0x65   : > { %v3907_v54 = vpack.c.bf16 %v1047_v51, %v1045_v50  ;;  %v1044_v55 = vld [vmem:[#allocation4 + $0x100] sm:$0xff]  ;;  %v2925_v57 = vld [vmem:[%s5147_s1 + $0xb8] sm:$0xff]  ;;  %881 = vperm.xlu0 %4440, %v877_v49   ;;  %v1046_v58 = vld [vmem:[#allocation4 + $0x110] sm:$0xff] }
  0x66   : > { %3726 = vmatpush3.bf16.msra.mxu0 %v3723_v9  ;;  %v878_v59 = vld [vmem:[%s5152_s6 + $0x8] sm:$0xff]  ;;  %v3909_v60 = vpack.c.bf16 %v1046_v58, %v1044_v55  ;;  %v1051_v62 = vld [vmem:[#allocation4 + $0x138] sm:$0xff]  ;;  %v3759_v1 = vpack.c.bf16 %v2925_v57, %v2924_v56  ;;  %v1048_v2 = vld [vmem:[#allocation4 + $0x120] sm:$0xff] }
  0x67   : > { %3728 = vmatprep.subr.bf16.mxu0 %v3727_v16  ;;  %3908 = vmatprep.subr.bf16.mxu1 %v3907_v54  ;;  %v1049_v61 = vld [vmem:[#allocation4 + $0x128] sm:$0xff]  ;;  %v2926_v3 = vld [vmem:[%s5147_s1 + $0xc0] sm:$0xff]  ;;  %v1050_v5 = vld [vmem:[#allocation4 + $0x130] sm:$0xff] }
  0x68   : > { %v3911_v63 = vpack.c.bf16 %v1051_v62, %v1049_v61  ;;  %3910 = vmatpush1.bf16.msra.mxu1 %v3909_v60  ;;  %v2927_v4 = vld [vmem:[%s5147_s1 + $0xc8] sm:$0xff]  ;;  %v2986_v6 = vld [vmem:[%s5152_s6 + $0x20] sm:$0xff]  ;;  %v3913_v7 = vpack.c.bf16 %v1050_v5, %v1048_v2  ;;  %v1055_v9 = vld [vmem:[#allocation4 + $0x158] sm:$0xff] }
  0x69   : > { %v356_v24 = vld [vmem:[#allocation2] sm:$0xf0]  ;;  %v358_v34 = vld [vmem:[#allocation2 + $0x20] sm:$0xf]  ;;  %886 = vperm.xlu0 %4440, %v878_v59   ;;  %v1053_v8 = vld [vmem:[#allocation4 + $0x148] sm:$0xff]  ;;  %v3763_v11 = vpack.c.bf16 %v2927_v4, %v2926_v3 }
  0x6a   : > { %3730 = vmatpush3.bf16.msra.mxu0 %v3727_v16  ;;  %v378_v25 = vrot.slane %v356_v24, 4  ;;  %v462_v37 = vld [vmem:[#allocation2] sm:$0xe0]  ;;  %v381_v38 = vrot.slane %v358_v34, 4  ;;  %3912 = vmatprep.subr.bf16.mxu1 %v3911_v63  ;;  %v3915_v10 = vpack.c.bf16 %v1055_v9, %v1053_v8  ;;  %v2928_v13 = vld [vmem:[%s5147_s1 + $0xd0] sm:$0xff]  ;;  %v2929_v14 = vld [vmem:[%s5147_s1 + $0xd8] sm:$0xff] }
  0x6b   : > { %3732 = vmatprep.subr.bf16.mxu0 %v3731_v20  ;;  %v484_v40 = vrot.slane %v462_v37, 5  ;;  %v1052_v12 = vld [vmem:[#allocation4 + $0x140] sm:$0xff]  ;;  %v1054_v15 = vld [vmem:[#allocation4 + $0x150] sm:$0xff]  ;;  %v3767_v18 = vpack.c.bf16 %v2929_v14, %v2928_v13  ;;  %v2931_v21 = vld [vmem:[%s5147_s1 + $0xe8] sm:$0xff] }
  0x6c   : > { %v380_v29 = vsel %vm339_vm0, %v378_v25, %v379_v23  ;;  %v382_v44 = vsel %vm339_vm0, %v379_v23, %v381_v38  ;;  %3914 = vmatpush1.bf16.msra.mxu1 %v3913_v7  ;;  %v2989_v16 = vld [vmem:[%s5152_s6 + $0x30] sm:$0xff]  ;;  %v3917_v17 = vpack.c.bf16 %v1054_v15, %v1052_v12  ;;  %v2933_v24 = vld [vmem:[%s5147_s1 + $0xf8] sm:$0xff]  ;;  %v2934_v27 = vld [vmem:[%s5147_s1 + $0x100] sm:$0xff] }
  0x6d   : > { %3397 = vmatprep.mubr.f32.mxu0 %v380_v29  ;;  %v486_v46 = vsel %vm483_vm1, %v484_v40, %v485_v41  ;;  %2237 = vperm.xlu0 %4440, %v2986_v6   ;;  %v2932_v23 = vld [vmem:[%s5147_s1 + $0xf0] sm:$0xff]  ;;  %v2935_v28 = vld [vmem:[%s5147_s1 + $0x108] sm:$0xff]  ;;  %v568_v29 = vld [vmem:[#allocation2] sm:$0xc0] }
  0x6e   : > { %3734 = vmatpush3.bf16.msra.mxu0 %v3731_v20  ;;  %3916 = vmatprep.subr.bf16.mxu1 %v3915_v10  ;;  %v2930_v20 = vld [vmem:[%s5147_s1 + $0xe0] sm:$0xff]  ;;  %v3775_v25 = vpack.c.bf16 %v2933_v24, %v2932_v23  ;;  %v3779_v31 = vpack.c.bf16 %v2935_v28, %v2934_v27  ;;  %v590_v32 = vrot.slane %v568_v29, 6  ;;  %v2936_v34 = vld [vmem:[%s5147_s1 + $0x110] sm:$0xff]  ;;  %v2937_v35 = vld [vmem:[%s5147_s1 + $0x118] sm:$0xff] }
  0x6f   : > { %3736 = vmatprep.subr.bf16.mxu0 %v3735_v26  ;;  %v3771_v22 = vpack.c.bf16 %v2931_v21, %v2930_v20  ;;  %v3783_v37 = vpack.c.bf16 %v2937_v35, %v2936_v34  ;;  %v2939_v40 = vld [vmem:[%s5147_s1 + $0x128] sm:$0xff]  ;;  %v2941_v43 = vld [vmem:[%s5147_s1 + $0x138] sm:$0xff]  ;;  %v2944_v48 = vld [vmem:[%s5147_s1 + $0x150] sm:$0xff] }
  0x70   : > { %3918 = vmatpush1.bf16.msra.mxu1 %v3917_v17  ;;  %v2945_v49 = vld [vmem:[%s5147_s1 + $0x158] sm:$0xff]  ;;  %v2946_v51 = vld [vmem:[%s5147_s1 + $0x160] sm:$0xff]  ;;  %v2948_v54 = vld [vmem:[%s5147_s1 + $0x170] sm:$0xff] }
  0x71   : > { %2790 = vperm.xlu0 %4440, %v2989_v16   ;;  %v3799_v50 = vpack.c.bf16 %v2945_v49, %v2944_v48  ;;  %v2949_v55 = vld [vmem:[%s5147_s1 + $0x178] sm:$0xff]  ;;  %v569_v57 = vld [vmem:[#allocation2 + $0x20] sm:$0x3f]  ;;  %v2951_v59 = vld [vmem:[%s5147_s1 + $0x188] sm:$0xff] }
  0x72   : > { %3738 = vmatpush3.bf16.msra.mxu0 %v3735_v26  ;;  %v463_v26 = vld [vmem:[#allocation2 + $0x20] sm:$0x1f]  ;;  %v3807_v56 = vpack.c.bf16 %v2949_v55, %v2948_v54  ;;  %v674_v60 = vld [vmem:[#allocation2] sm:$0x80]  ;;  %v593_v61 = vrot.slane %v569_v57, 6  ;;  %v2952_v2 = vld [vmem:[%s5147_s1 + $0x190] sm:$0xff] }
  0x73   : > { %3740 = vmatprep.subr.bf16.mxu0 %v3739_v30  ;;  %v2950_v58 = vld [vmem:[%s5147_s1 + $0x180] sm:$0xff]  ;;  %v696_v63 = vrot.slane %v674_v60, 7  ;;  %v2953_v3 = vld [vmem:[%s5147_s1 + $0x198] sm:$0xff]  ;;  %v2955_v8 = vld [vmem:[%s5147_s1 + $0x1a8] sm:$0xff] }
  0x74   : > { %v3811_v62 = vpack.c.bf16 %v2951_v59, %v2950_v58  ;;  %v3815_v5 = vpack.c.bf16 %v2953_v3, %v2952_v2  ;;  %v2954_v7 = vld [vmem:[%s5147_s1 + $0x1a0] sm:$0xff]  ;;  %v2956_v10 = vld [vmem:[%s5147_s1 + $0x1b0] sm:$0xff]  ;;  %v2959_v14 = vld [vmem:[%s5147_s1 + $0x1c8] sm:$0xff] }
  0x75   : > { %v3819_v9 = vpack.c.bf16 %v2955_v8, %v2954_v7  ;;  %v2958_v13 = vld [vmem:[%s5147_s1 + $0x1c0] sm:$0xff]  ;;  %v2960_v16 = vld [vmem:[%s5147_s1 + $0x1d0] sm:$0xff]  ;;  %v2961_v17 = vld [vmem:[%s5147_s1 + $0x1d8] sm:$0xff] }
  0x76   : > { %3742 = vmatpush3.bf16.msra.mxu0 %v3739_v30  ;;  %v487_v30 = vrot.slane %v463_v26, 5  ;;  %v3827_v15 = vpack.c.bf16 %v2959_v14, %v2958_v13  ;;  %v2962_v20 = vld [vmem:[%s5147_s1 + $0x1e0] sm:$0xff]  ;;  %v2963_v21 = vld [vmem:[%s5147_s1 + $0x1e8] sm:$0xff]  ;;  %v2964_v23 = vld [vmem:[%s5147_s1 + $0x1f0] sm:$0xff] }
  0x77   : > { %3744 = vmatprep.subr.bf16.mxu0 %v3743_v33  ;;  %v2965_v24 = vld [vmem:[%s5147_s1 + $0x1f8] sm:$0xff]  ;;  %v675_v26 = vld [vmem:[#allocation2 + $0x20] sm:$0x7f]  ;;  %v2967_v28 = vld [vmem:[%s5147_s1 + $0x208] sm:$0xff] }
  0x78   : > { %v488_v36 = vsel %vm483_vm1, %v485_v41, %v487_v30  ;;  %v2940_v41 = vld [vmem:[%s5147_s1 + $0x130] sm:$0xff]  ;;  %v2966_v27 = vld [vmem:[%s5147_s1 + $0x200] sm:$0xff]  ;;  %v699_v29 = vrot.slane %v675_v26, 7  ;;  %v923_v57 = vld [vmem:[#allocation4 + $0x28] sm:$0xff] }
  0x79   : > { %v3843_v30 = vpack.c.bf16 %v2967_v28, %v2966_v27  ;;  %v2970_v35 = vld [vmem:[%s5147_s1 + $0x220] sm:$0xff]  ;;  %v2980_v49 = vld [vmem:[%s5147_s1 + $0x270] sm:$0xff]  ;;  %v925_v58 = vld [vmem:[#allocation4 + $0x38] sm:$0xff] }
  0x7a   : > { %3746 = vmatpush3.bf16.msra.mxu0 %v3743_v33  ;;  %v591_v33 = vrot.slane %v4757_v19, 6  ;;  %v918_v55 = vld [vmem:[#allocation4] sm:$0xff]  ;;  %v929_v2 = vld [vmem:[#allocation4 + $0x58] sm:$0xff]  ;;  %v1057_v8 = vld [vmem:[#allocation4 + $0x168] sm:$0xff] }
  0x7b   : > { %3748 = vmatprep.subr.bf16.mxu0 %v3747_v39  ;;  %v780_v59 = vld [vmem:[#allocation2 + $0x20] sm:$0xff]  ;;  %v1062_v28 = vld [vmem:[#allocation4 + $0x190] sm:$0xff] }
  0x7c   : > { %v592_v38 = vsel %vm589_vm2, %v590_v32, %v591_v33  ;;  %v594_v4 = vsel %vm589_vm2, %v591_v33, %v593_v61  ;;  %v2969_v32 = vld [vmem:[%s5147_s1 + $0x218] sm:$0xff]  ;;  %v3879_v61 = vpack.c.bf16 %v925_v58, %v923_v57  ;;  %v1056_v13 = vld [vmem:[#allocation4 + $0x160] sm:$0xff]  ;;  %v947_v58 = vld [vmem:[#allocation4 + $0xe8] sm:$0xff] }
  0x7d   : > { %3398 = vmatmul.mubr.f32.vlgmr.msra.gmra.mrb[0].mxu0 %v382_v44  ;;  %v3791_v44 = vpack.c.bf16 %v2941_v43, %v2940_v41  ;;  %v2976_v43 = vld [vmem:[%s5147_s1 + $0x250] sm:$0xff]  ;;  %v1060_v26 = vld [vmem:[#allocation4 + $0x180] sm:$0xff]  ;;  %v1075_v57 = vld [vmem:[#allocation4 + $0x1f8] sm:$0xff] }
  0x7e   : > { %3750 = vmatpush3.bf16.msra.mxu0 %v3747_v39  ;;  %3432 = vmatprep.mubr.f32.mxu0 %v486_v46  ;;  %v2938_v39 = vld [vmem:[%s5147_s1 + $0x120] sm:$0xff]  ;;  %v2943_v46 = vld [vmem:[%s5147_s1 + $0x148] sm:$0xff] }
  0x7f   : > { %3752 = vmatprep.subr.bf16.mxu0 %v3751_v45  ;;  %v3787_v42 = vpack.c.bf16 %v2939_v40, %v2938_v39  ;;  %v2973_v39 = vld [vmem:[%s5147_s1 + $0x238] sm:$0xff] }
  0x82   : > { %3754 = vmatpush3.bf16.msra.mxu0 %v3751_v45  ;;  %v2942_v45 = vld [vmem:[%s5147_s1 + $0x140] sm:$0xff] }
  0x83   : > { %3756 = vmatprep.subr.bf16.mxu0 %v3755_v52  ;;  %v3795_v47 = vpack.c.bf16 %v2943_v46, %v2942_v45  ;;  %v2978_v46 = vld [vmem:[%s5147_s1 + $0x260] sm:$0xff] }
  0x86   : > { %3758 = vmatpush3.bf16.msra.mxu0 %v3755_v52  ;;  %v2947_v52 = vld [vmem:[%s5147_s1 + $0x168] sm:$0xff] }
  0x87   : > { %3760 = vmatprep.subr.bf16.mxu0 %v3759_v1  ;;  %v3803_v53 = vpack.c.bf16 %v2947_v52, %v2946_v51  ;;  %v919_v52 = vld [vmem:[#allocation4 + $0x8] sm:$0xff] }
  0x8a   : > { %3762 = vmatpush3.bf16.msra.mxu0 %v3759_v1  ;;  %v697_v1 = vrot.slane %v4757_v19, 7 }
  0x8b   : > { %3764 = vmatprep.subr.bf16.mxu0 %v3763_v11 }
  0x8c   : > { %v698_v6 = vsel %vm695_vm3, %v696_v63, %v697_v1  ;;  %v700_v33 = vsel %vm695_vm3, %v697_v1, %v699_v29  ;;  %v924_v63 = vld [vmem:[#allocation4 + $0x30] sm:$0xff]  ;;  %v927_v1 = vld [vmem:[#allocation4 + $0x48] sm:$0xff]  ;;  %v934_v29 = vld [vmem:[#allocation4 + $0x80] sm:$0xff] }
  0x8e   : > { %3766 = vmatpush3.bf16.msra.mxu0 %v3763_v11  ;;  %v2957_v11 = vld [vmem:[%s5147_s1 + $0x1b8] sm:$0xff] }
  0x8f   : > { %3768 = vmatprep.subr.bf16.mxu0 %v3767_v18  ;;  %v3823_v12 = vpack.c.bf16 %v2957_v11, %v2956_v10  ;;  %v931_v11 = vld [vmem:[#allocation4 + $0x68] sm:$0xff] }
  0x92   : > { %3770 = vmatpush3.bf16.msra.mxu0 %v3767_v18  ;;  %v3831_v18 = vpack.c.bf16 %v2961_v17, %v2960_v16  ;;  %v930_v16 = vld [vmem:[#allocation4 + $0x60] sm:$0xff]  ;;  %v932_v17 = vld [vmem:[#allocation4 + $0x70] sm:$0xff] }
  0x93   : > { %3772 = vmatprep.subr.bf16.mxu0 %v3771_v22 }
  0x96   : > { %3774 = vmatpush3.bf16.msra.mxu0 %v3771_v22  ;;  %v3835_v22 = vpack.c.bf16 %v2963_v21, %v2962_v20  ;;  %v3889_v20 = vpack.c.bf16 %v932_v17, %v930_v16  ;;  %v1061_v21 = vld [vmem:[#allocation4 + $0x188] sm:$0xff] }
  0x97   : > { %3776 = vmatprep.subr.bf16.mxu0 %v3775_v25  ;;  %v2987_v16 = vld [vmem:[%s5152_s6 + $0x28] sm:$0xff] }
  0x9a   : > { %3778 = vmatpush3.bf16.msra.mxu0 %v3775_v25  ;;  %v3839_v25 = vpack.c.bf16 %v2965_v24, %v2964_v23  ;;  %v935_v24 = vld [vmem:[#allocation4 + $0x88] sm:$0xff] }
  0x9b   : > { %3780 = vmatprep.subr.bf16.mxu0 %v3779_v31 }
  0x9d   : > { %3433 = vmatmul.mubr.f32.vlgmr.msra.gmra.mrb[0].mxu0 %v488_v36  ;;  %v2971_v36 = vld [vmem:[%s5147_s1 + $0x228] sm:$0xff] }
  0x9e   : > { %3782 = vmatpush3.bf16.msra.mxu0 %v3779_v31  ;;  %3467 = vmatprep.mubr.f32.mxu0 %v592_v38  ;;  %v2968_v31 = vld [vmem:[%s5147_s1 + $0x210] sm:$0xff] }
  0x9f   : > { %3784 = vmatprep.subr.bf16.mxu0 %v3783_v37  ;;  %v3847_v34 = vpack.c.bf16 %v2969_v32, %v2968_v31  ;;  %v2972_v38 = vld [vmem:[%s5147_s1 + $0x230] sm:$0xff]  ;;  %v3925_v31 = vpack.c.bf16 %v1062_v28, %v1060_v26 }
  0xa0   : > { %v3855_v40 = vpack.c.bf16 %v2973_v39, %v2972_v38  ;;  %v1064_v38 = vld [vmem:[#allocation4 + $0x1a0] sm:$0xff] }
  0xa2   : > { %3786 = vmatpush3.bf16.msra.mxu0 %v3783_v37  ;;  %v3851_v37 = vpack.c.bf16 %v2971_v36, %v2970_v35  ;;  %v939_v36 = vld [vmem:[#allocation4 + $0xa8] sm:$0xff] }
  0xa3   : > { %3788 = vmatprep.subr.bf16.mxu0 %v3787_v42 }
  0xa6   : > { %3790 = vmatpush3.bf16.msra.mxu0 %v3787_v42  ;;  %v2974_v42 = vld [vmem:[%s5147_s1 + $0x240] sm:$0xff] }
  0xa7   : > { %3792 = vmatprep.subr.bf16.mxu0 %v3791_v44 }
  0xaa   : > { %3794 = vmatpush3.bf16.msra.mxu0 %v3791_v44  ;;  %v2977_v44 = vld [vmem:[%s5147_s1 + $0x258] sm:$0xff] }
  0xab   : > { %3796 = vmatprep.subr.bf16.mxu0 %v3795_v47  ;;  %v3863_v45 = vpack.c.bf16 %v2977_v44, %v2976_v43  ;;  %v1069_v44 = vld [vmem:[#allocation4 + $0x1c8] sm:$0xff] }
  0xae   : > { %3798 = vmatpush3.bf16.msra.mxu0 %v3795_v47  ;;  %v2979_v47 = vld [vmem:[%s5147_s1 + $0x268] sm:$0xff] }
  0xaf   : > { %3800 = vmatprep.subr.bf16.mxu0 %v3799_v50  ;;  %v3867_v48 = vpack.c.bf16 %v2979_v47, %v2978_v46  ;;  %v943_v47 = vld [vmem:[#allocation4 + $0xc8] sm:$0xff] }
  0xb2   : > { %3802 = vmatpush3.bf16.msra.mxu0 %v3799_v50  ;;  %v2981_v50 = vld [vmem:[%s5147_s1 + $0x278] sm:$0xff] }
  0xb3   : > { %3804 = vmatprep.subr.bf16.mxu0 %v3803_v53  ;;  %v3871_v51 = vpack.c.bf16 %v2981_v50, %v2980_v49  ;;  %v1068_v49 = vld [vmem:[#allocation4 + $0x1c0] sm:$0xff] }
  0xb6   : > { %3806 = vmatpush3.bf16.msra.mxu0 %v3803_v53  ;;  %v921_v53 = vld [vmem:[#allocation4 + $0x18] sm:$0xff] }
  0xb7   : > { %3808 = vmatprep.subr.bf16.mxu0 %v3807_v56  ;;  %v3875_v54 = vpack.c.bf16 %v921_v53, %v919_v52  ;;  %v942_v52 = vld [vmem:[#allocation4 + $0xc0] sm:$0xff]  ;;  %v944_v53 = vld [vmem:[#allocation4 + $0xd0] sm:$0xff] }
  0xba   : > { %3810 = vmatpush3.bf16.msra.mxu0 %v3807_v56  ;;  %v920_v56 = vld [vmem:[#allocation4 + $0x10] sm:$0xff] }
  0xbb   : > { %3812 = vmatprep.subr.bf16.mxu0 %v3811_v62  ;;  %v3877_v60 = vpack.c.bf16 %v920_v56, %v918_v55  ;;  %v3901_v55 = vpack.c.bf16 %v944_v53, %v942_v52  ;;  %v1073_v56 = vld [vmem:[#allocation4 + $0x1e8] sm:$0xff] }
  0xbd   : > { %3468 = vmatmul.mubr.f32.vlgmr.msra.gmra.mrb[0].mxu0 %v594_v4  ;;  %v3883_v4 = vpack.c.bf16 %v929_v2, %v927_v1  ;;  %v946_v2 = vld [vmem:[#allocation4 + $0xe0] sm:$0xff] }
  0xbe   : > { %3814 = vmatpush3.bf16.msra.mxu0 %v3811_v62  ;;  %3502 = vmatprep.mubr.f32.mxu0 %v698_v6  ;;  %v922_v62 = vld [vmem:[#allocation4 + $0x20] sm:$0xff]  ;;  %v928_v6 = vld [vmem:[#allocation4 + $0x50] sm:$0xff] }
  0xbf   : > { %3816 = vmatprep.subr.bf16.mxu0 %v3815_v5  ;;  %v3881_v3 = vpack.c.bf16 %v924_v63, %v922_v62  ;;  %v1074_v62 = vld [vmem:[#allocation4 + $0x1f0] sm:$0xff] }
  0xc2   : > { %3818 = vmatpush3.bf16.msra.mxu0 %v3815_v5  ;;  %v926_v5 = vld [vmem:[#allocation4 + $0x40] sm:$0xff] }
  0xc3   : > { %3820 = vmatprep.subr.bf16.mxu0 %v3819_v9  ;;  %v3885_v7 = vpack.c.bf16 %v928_v6, %v926_v5  ;;  %v1172_v6 = vld [vmem:[#allocation4 + $0x218] sm:$0xff] }
  0xc6   : > { %3822 = vmatpush3.bf16.msra.mxu0 %v3819_v9  ;;  %v1059_v9 = vld [vmem:[#allocation4 + $0x178] sm:$0xff] }
  0xc7   : > { %3824 = vmatprep.subr.bf16.mxu0 %v3823_v12  ;;  %v3919_v10 = vpack.c.bf16 %v1059_v9, %v1057_v8  ;;  %v351_v8 = vlaneseq }
  0xc9   : > { %3920 = vmatprep.subr.bf16.mxu1 %v3919_v10  ;;  %v4999_v9 = vshrl.u32 %v351_v8, 7  ;;  %v1192_v8 = vld [vmem:[#allocation4 + $0x2b8] sm:$0xff] }
  0xca   : > { %3826 = vmatpush3.bf16.msra.mxu0 %v3823_v12  ;;  %v933_v12 = vld [vmem:[#allocation4 + $0x78] sm:$0xff] }
  0xcb   : > { %3828 = vmatprep.subr.bf16.mxu0 %v3827_v15  ;;  %v3887_v14 = vpack.c.bf16 %v933_v12, %v931_v11  ;;  %v5002_v10 = vsub.s32 0, %v4999_v9  ;;  %v2983_v11 = vld [vmem:[%s5152_s6 + $0x10] sm:$0xff]  ;;  %v349_v12 = vld [vmem:[%s5151_s5] sm:$0x3] }
  0xcc   : > { %1540 = vperm.xlu1 %4441, %v2983_v11  }
  0xce   : > { %3830 = vmatpush3.bf16.msra.mxu0 %v3827_v15  ;;  %v1058_v15 = vld [vmem:[#allocation4 + $0x170] sm:$0xff] }
  0xcf   : > { %3832 = vmatprep.subr.bf16.mxu0 %v3831_v18 }
  0xd2   : > { %3834 = vmatpush3.bf16.msra.mxu0 %v3831_v18  ;;  %v3921_v18 = vpack.c.bf16 %v1058_v15, %v1056_v13  ;;  %v2984_v13 = vld [vmem:[%s5152_s6 + $0x18] sm:$0xff] }
  0xd3   : > { %3836 = vmatprep.subr.bf16.mxu0 %v3835_v22  ;;  %1545 = vperm.xlu1 %4441, %v2984_v13   ;;  %v1189_v13 = vld [vmem:[#allocation4 + $0x2a0] sm:$0xff] }
  0xd4   : > { %3922 = vmatpush1.bf16.msra.mxu1 %v3921_v18 }
  0xd6   : > { %3838 = vmatpush3.bf16.msra.mxu0 %v3835_v22  ;;  %v1063_v22 = vld [vmem:[#allocation4 + $0x198] sm:$0xff] }
  0xd7   : > { %3840 = vmatprep.subr.bf16.mxu0 %v3839_v25  ;;  %v3923_v23 = vpack.c.bf16 %v1063_v22, %v1061_v21  ;;  %2242 = vperm.xlu1 %4441, %v2987_v16  }
  0xd9   : > { %3924 = vmatprep.subr.bf16.mxu1 %v3923_v23  ;;  %v2990_v23 = vld [vmem:[%s5152_s6 + $0x38] sm:$0xff] }
  0xda   : > { %3842 = vmatpush3.bf16.msra.mxu0 %v3839_v25  ;;  %v937_v25 = vld [vmem:[#allocation4 + $0x98] sm:$0xff]  ;;  %3926 = vmatpush1.bf16.msra.mxu1 %v3925_v31  ;;  %v1169_v31 = vld [vmem:[#allocation4 + $0x200] sm:$0xff] }
  0xdb   : > { %3844 = vmatprep.subr.bf16.mxu0 %v3843_v30  ;;  %v3891_v27 = vpack.c.bf16 %v937_v25, %v935_v24  ;;  %2795 = vperm.xlu1 %4441, %v2990_v23  }
  0xdd   : > { %3503 = vmatmul.mubr.f32.vlgmr.msra.gmra.mrb[0].mxu0 %v700_v33  ;;  %v1065_v33 = vld [vmem:[#allocation4 + $0x1a8] sm:$0xff] }
  0xde   : > { %3846 = vmatpush3.bf16.msra.mxu0 %v3843_v30  ;;  %3537 = vmatprep.mubr.f32.mxu0 %v4757_v19  ;;  %v2975_v19 = vld [vmem:[%s5147_s1 + $0x248] sm:$0xff]  ;;  %v936_v30 = vld [vmem:[#allocation4 + $0x90] sm:$0xff] }
  0xdf   : > { %3848 = vmatprep.subr.bf16.mxu0 %v3847_v34  ;;  %v3859_v41 = vpack.c.bf16 %v2975_v19, %v2974_v42  ;;  %v3893_v32 = vpack.c.bf16 %v936_v30, %v934_v29  ;;  %v938_v42 = vld [vmem:[#allocation4 + $0xa0] sm:$0xff]  ;;  %v940_v19 = vld [vmem:[#allocation4 + $0xb0] sm:$0xff] }
  0xe0   : > { %v3897_v43 = vpack.c.bf16 %v940_v19, %v938_v42 }
  0xe2   : > { %3850 = vmatpush3.bf16.msra.mxu0 %v3847_v34  ;;  %v1067_v34 = vld [vmem:[#allocation4 + $0x1b8] sm:$0xff] }
  0xe3   : > { %3852 = vmatprep.subr.bf16.mxu0 %v3851_v37  ;;  %v3927_v35 = vpack.c.bf16 %v1067_v34, %v1065_v33  ;;  %v1174_v33 = vld [vmem:[#allocation4 + $0x228] sm:$0xff]  ;;  %v1176_v34 = vld [vmem:[#allocation4 + $0x238] sm:$0xff] }
  0xe4   : > { %v882_v15 = vpop.permute.xlu0 %881 }
  0xe5   : > { %3928 = vmatprep.subr.bf16.mxu1 %v3927_v35 }
  0xe6   : > { %3854 = vmatpush3.bf16.msra.mxu0 %v3851_v37  ;;  %v941_v37 = vld [vmem:[#allocation4 + $0xb8] sm:$0xff] }
  0xe7   : > { %3856 = vmatprep.subr.bf16.mxu0 %v3855_v40  ;;  %v3895_v39 = vpack.c.bf16 %v941_v37, %v939_v36 }
  0xe8   : > { %v887_v24 = vpop.permute.xlu0 %886 }
  0xea   : > { %3858 = vmatpush3.bf16.msra.mxu0 %v3855_v40  ;;  %v1066_v40 = vld [vmem:[#allocation4 + $0x1b0] sm:$0xff] }
  0xeb   : > { %3860 = vmatprep.subr.bf16.mxu0 %v3859_v41 }
  0xee   : > { %3862 = vmatpush3.bf16.msra.mxu0 %v3859_v41  ;;  %v3929_v41 = vpack.c.bf16 %v1066_v40, %v1064_v38 }
  0xef   : > { %3864 = vmatprep.subr.bf16.mxu0 %v3863_v45 }
  0xf0   : > { %3930 = vmatpush1.bf16.msra.mxu1 %v3929_v41 }
  0xf2   : > { %3866 = vmatpush3.bf16.msra.mxu0 %v3863_v45  ;;  %v1071_v45 = vld [vmem:[#allocation4 + $0x1d8] sm:$0xff] }
  0xf3   : > { %3868 = vmatprep.subr.bf16.mxu0 %v3867_v48  ;;  %v3931_v46 = vpack.c.bf16 %v1071_v45, %v1069_v44  ;;  %v1173_v44 = vld [vmem:[#allocation4 + $0x220] sm:$0xff]  ;;  %v1175_v45 = vld [vmem:[#allocation4 + $0x230] sm:$0xff] }
  0xf4   : > { %v3945_v52 = vpack.c.bf16 %v1175_v45, %v1173_v44  ;;  %v1303_v45 = vld [vmem:[#allocation4 + $0x348] sm:$0xff] }
  0xf5   : > { %3932 = vmatprep.subr.bf16.mxu1 %v3931_v46 }
  0xf6   : > { %3870 = vmatpush3.bf16.msra.mxu0 %v3867_v48  ;;  %v945_v48 = vld [vmem:[#allocation4 + $0xd8] sm:$0xff] }
  0xf7   : > { %3872 = vmatprep.subr.bf16.mxu0 %v3871_v51  ;;  %v3899_v50 = vpack.c.bf16 %v945_v48, %v943_v47 }
  0xfa   : > { %3874 = vmatpush3.bf16.msra.mxu0 %v3871_v51  ;;  %v1070_v51 = vld [vmem:[#allocation4 + $0x1d0] sm:$0xff] }
  0xfb   : > { %3876 = vmatprep.subr.bf16.mxu0 %v3875_v54  ;;  %v3933_v54 = vpack.c.bf16 %v1070_v51, %v1068_v49  ;;  %v1180_v51 = vld [vmem:[#allocation4 + $0x258] sm:$0xff] }
  0xfd   : > { %3538 = vmatmul.mubr.f32.vlgmr.msra.gmra.mrb[0].mxu0 %v780_v59  ;;  %v3935_v59 = vpack.c.bf16 %v1075_v57, %v1073_v56  ;;  %3934 = vmatpush1.bf16.msra.mxu1 %v3933_v54  ;;  %v1177_v54 = vld [vmem:[#allocation4 + $0x240] sm:$0xff] }
  0xfe   : > { %3878 = vmatpush1.bf16.msra.mxu0 %v3877_v60  ;;  %1024 = vmatprep.mubr.f32.mxu0 %v4550_v0  ;;  %v949_v60 = vld [vmem:[#allocation4 + $0xf8] sm:$0xff] }
  0xff   : > { %3880 = vmatprep.subr.bf16.mxu0 %v3879_v61  ;;  %v1072_v61 = vld [vmem:[#allocation4 + $0x1e0] sm:$0xff]  ;;  %v3903_v63 = vpack.c.bf16 %v949_v60, %v947_v58  ;;  %3936 = vmatprep.subr.bf16.mxu1 %v3935_v59  ;;  %v1182_v58 = vld [vmem:[#allocation4 + $0x268] sm:$0xff]  ;;  %v1184_v59 = vld [vmem:[#allocation4 + $0x278] sm:$0xff] }
 0x100   : > { %v3937_v1 = vpack.c.bf16 %v1074_v62, %v1072_v61  ;;  %v3951_v61 = vpack.c.bf16 %v1184_v59, %v1182_v58  ;;  %v1181_v62 = vld [vmem:[#allocation4 + $0x260] sm:$0xff]  ;;  %v1308_v58 = vld [vmem:[#allocation4 + $0x370] sm:$0xff]  ;;  %v1311_v59 = vld [vmem:[#allocation4 + $0x388] sm:$0xff] }
 0x102   : > { %3882 = vmatpush1.bf16.msra.mxu0 %v3881_v3  ;;  %v948_v3 = vld [vmem:[#allocation4 + $0xf0] sm:$0xff]  ;;  %3938 = vmatpush1.bf16.msra.mxu1 %v3937_v1  ;;  %v1186_v1 = vld [vmem:[#allocation4 + $0x288] sm:$0xff] }
 0x103   : > { %3884 = vmatprep.subr.bf16.mxu0 %v3883_v4  ;;  %v1170_v4 = vld [vmem:[#allocation4 + $0x208] sm:$0xff]  ;;  %v3905_v5 = vpack.c.bf16 %v948_v3, %v946_v2  ;;  %v1188_v2 = vld [vmem:[#allocation4 + $0x298] sm:$0xff] }
 0x106   : > { %3886 = vmatpush1.bf16.msra.mxu0 %v3885_v7  ;;  %v3939_v7 = vpack.c.bf16 %v1172_v6, %v1170_v4  ;;  %v3955_v4 = vpack.c.bf16 %v1188_v2, %v1186_v1  ;;  %v1187_v6 = vld [vmem:[#allocation4 + $0x290] sm:$0xff]  ;;  %v1315_v2 = vld [vmem:[#allocation4 + $0x3a8] sm:$0xff] }
 0x107   : > { %3888 = vmatprep.subr.bf16.mxu0 %v3887_v14  ;;  %v354_v14 = vrot.slane %v349_v12, %v5002_v10  ;;  %v1312_v1 = vld [vmem:[#allocation4 + $0x390] sm:$0xff] }
 0x108   : > { %3940 = vmatprep.subr.bf16.mxu1 %v3939_v7  ;;  %v1190_v7 = vld [vmem:[#allocation4 + $0x2a8] sm:$0xff] }
 0x109   : > { %v3959_v12 = vpack.c.bf16 %v1192_v8, %v1190_v7  ;;  %v1316_v7 = vld [vmem:[#allocation4 + $0x3b0] sm:$0xff]  ;;  %v1319_v8 = vld [vmem:[#allocation4 + $0x3c8] sm:$0xff] }
 0x10a   : > { %3890 = vmatpush1.bf16.msra.mxu0 %v3889_v20 }
 0x10b   : > { %3892 = vmatprep.subr.bf16.mxu0 %v3891_v27 }
 0x10e   : > { %3894 = vmatpush1.bf16.msra.mxu0 %v3893_v32  ;;  %v1171_v32 = vld [vmem:[#allocation4 + $0x210] sm:$0xff] }
 0x10f   : > { %3896 = vmatprep.subr.bf16.mxu0 %v3895_v39  ;;  %v3941_v38 = vpack.c.bf16 %v1171_v32, %v1169_v31 }
 0x112   : > { %3898 = vmatpush1.bf16.msra.mxu0 %v3897_v43  ;;  %v3943_v43 = vpack.c.bf16 %v1176_v34, %v1174_v33  ;;  %v1294_v33 = vld [vmem:[#allocation4 + $0x300] sm:$0xff]  ;;  %v1296_v34 = vld [vmem:[#allocation4 + $0x310] sm:$0xff] }
 0x113   : > { %3900 = vmatprep.subr.bf16.mxu0 %v3899_v50  ;;  %v1178_v50 = vld [vmem:[#allocation4 + $0x248] sm:$0xff] }
 0x114   : > { %v3947_v53 = vpack.c.bf16 %v1180_v51, %v1178_v50  ;;  %v1302_v50 = vld [vmem:[#allocation4 + $0x340] sm:$0xff]  ;;  %v1304_v51 = vld [vmem:[#allocation4 + $0x350] sm:$0xff] }
 0x116   : > { %3902 = vmatpush1.bf16.msra.mxu0 %v3901_v55  ;;  %v1179_v55 = vld [vmem:[#allocation4 + $0x250] sm:$0xff] }
 0x117   : > { %3904 = vmatprep.subr.bf16.mxu0 %v3903_v63  ;;  %v3949_v60 = vpack.c.bf16 %v1179_v55, %v1177_v54  ;;  %v1183_v63 = vld [vmem:[#allocation4 + $0x270] sm:$0xff]  ;;  %v1309_v54 = vld [vmem:[#allocation4 + $0x378] sm:$0xff]  ;;  %v3981_v55 = vpack.c.bf16 %v1304_v51, %v1302_v50 }
 0x118   : > { %v3953_v3 = vpack.c.bf16 %v1183_v63, %v1181_v62  ;;  %v1310_v63 = vld [vmem:[#allocation4 + $0x380] sm:$0xff] }
 0x11a   : > { %3906 = vmatpush1.bf16.msra.mxu0 %v3905_v5  ;;  %v1185_v5 = vld [vmem:[#allocation4 + $0x280] sm:$0xff] }
 0x11b   : > { %v3957_v11 = vpack.c.bf16 %v1187_v6, %v1185_v5  ;;  %v1314_v6 = vld [vmem:[#allocation4 + $0x3a0] sm:$0xff] }
 0x1d0   : > { %v3539_v17 = vpop.f32.mrb[0].mxu0 }
 0x1d1   : > { %v4355_v18 = vadd.f32 %v3539_v17, %v354_v14  ;;  %v864_v20 = vpop.f32.mrb[1].mxu0 }
 0x1d2   : > { %v4356_v21 = vadd.f32 %v864_v20, %v354_v14  ;;  %v1194_v14 = vld [vmem:[#allocation4 + $0x2c8] sm:$0xff]  ;;  %v1195_v20 = vld [vmem:[#allocation4 + $0x2d0] sm:$0xff] }
 0x1d3   : > { %v876_v22 = vmax.f32 %v4355_v18, 0.0  ;;  %v1193_v18 = vld [vmem:[#allocation4 + $0x2c0] sm:$0xff] }
 0x1d4   : > { %v875_v25 = vmax.f32 %v4356_v21, 0.0  ;;  %v1198_v21 = vld [vmem:[#allocation4 + $0x2e8] sm:$0xff]  ;;  %v3965_v23 = vpack.c.bf16 %v1195_v20, %v1193_v18  ;;  %v1322_v20 = vld [vmem:[#allocation4 + $0x3e0] sm:$0xff] }
 0x1d5   : > { %v890_v26 = vmul.f32 %v887_v24, %v876_v22  ;;  %v1200_v22 = vld [vmem:[#allocation4 + $0x2f8] sm:$0xff] }
 0x1d6   : > { %v889_v27 = vmul.f32 %v882_v15, %v875_v25  ;;  %v1196_v15 = vld [vmem:[#allocation4 + $0x2d8] sm:$0xff]  ;;  %v3967_v24 = vpack.c.bf16 %v1200_v22, %v1198_v21  ;;  %v1197_v25 = vld [vmem:[#allocation4 + $0x2e0] sm:$0xff]  ;;  %v1324_v21 = vld [vmem:[#allocation4 + $0x3f0] sm:$0xff] }
 0x1d7   : > { %v894_v28 = vrot.slane %v890_v26, 4  ;;  %v3963_v17 = vpack.c.bf16 %v1196_v15, %v1194_v14  ;;  %v1199_v26 = vld [vmem:[#allocation4 + $0x2f0] sm:$0xff]  ;;  %v1323_v15 = vld [vmem:[#allocation4 + $0x3e8] sm:$0xff] }
 0x1d8   : > { %v893_v29 = vrot.slane %v889_v27, 4  ;;  %v1295_v27 = vld [vmem:[#allocation4 + $0x308] sm:$0xff]  ;;  %v3969_v31 = vpack.c.bf16 %v1199_v26, %v1197_v25  ;;  %v1320_v14 = vld [vmem:[#allocation4 + $0x3d0] sm:$0xff]  ;;  %v4001_v25 = vpack.c.bf16 %v1324_v21, %v1322_v20  ;;  %v1738_v20 = vld [vmem:[#allocation6 + $0x180] sm:$0xff] }
 0x1d9   : > { %901 = vst [vmem:[#allocation3 + $0x20] sm:$0xf] %v894_v28  ;;  %v1419_v22 = vld [vmem:[#allocation4 + $0x408] sm:$0xff] }
 0x1da   : > { %v5021_v30 = vsel %vm339_vm0, %v893_v29, %v894_v28  ;;  %899 = vst [vmem:[#allocation3] sm:$0xf0] %v893_v29  ;;  %v1297_v28 = vld [vmem:[#allocation4 + $0x318] sm:$0xff] }
 0x1db   : > { %v954_v42 = vrot.slane %v5021_v30, 4  ;;  %v1079_v41 = vrot.slane %v5021_v30, 5  ;;  %v3971_v32 = vpack.c.bf16 %v1297_v28, %v1295_v27  ;;  %v1418_v27 = vld [vmem:[#allocation4 + $0x400] sm:$0xff]  ;;  %v1420_v28 = vld [vmem:[#allocation4 + $0x410] sm:$0xff] }
 0x1e0   : > { %v917_v35 = vld [vmem:[#allocation3 + $0x20] sm:$0xf] }
 0x1e1   : > { %v915_v36 = vld [vmem:[#allocation3] sm:$0xf0]  ;;  %v956_v48 = vrot.slane %v917_v35, 4 }
 0x1e2   : > { %v1041_v37 = vld [vmem:[#allocation3] sm:$0xe0]  ;;  %v1042_v39 = vld [vmem:[#allocation3 + $0x20] sm:$0x1f]  ;;  %v953_v40 = vrot.slane %v915_v36, 4  ;;  %v1299_v36 = vld [vmem:[#allocation4 + $0x328] sm:$0xff] }
 0x1e3   : > { %v1078_v19 = vrot.slane %v1041_v37, 5  ;;  %v1081_v49 = vrot.slane %v1042_v39, 5  ;;  %v957_v56 = vsel %vm339_vm0, %v954_v42, %v956_v48  ;;  %v1166_v29 = vld [vmem:[#allocation3] sm:$0xc0]  ;;  %v1301_v37 = vld [vmem:[#allocation4 + $0x338] sm:$0xff]  ;;  %v1204_v39 = vrot.slane %v5021_v30, 6 }
 0x1e4   : > { %v955_v46 = vsel %vm339_vm0, %v953_v40, %v954_v42  ;;  %v1203_v35 = vrot.slane %v1166_v29, 6  ;;  %v3973_v40 = vpack.c.bf16 %v1296_v34, %v1294_v33  ;;  %v3975_v42 = vpack.c.bf16 %v1301_v37, %v1299_v36  ;;  %v1292_v33 = vld [vmem:[#allocation3 + $0x20] sm:$0x7f]  ;;  %v1422_v37 = vld [vmem:[#allocation4 + $0x420] sm:$0xff] }
 0x1e5   : > { %v1080_v47 = vsel %vm483_vm1, %v1078_v19, %v1079_v41  ;;  %1025 = vmatmul.mubr.f32.vlgmr.msra.gmra.mrb[2].mxu0 %v955_v46  ;;  %v1082_v57 = vsel %vm483_vm1, %v1079_v41, %v1081_v49  ;;  %v1298_v19 = vld [vmem:[#allocation4 + $0x320] sm:$0xff]  ;;  %v1300_v41 = vld [vmem:[#allocation4 + $0x330] sm:$0xff]  ;;  %v1305_v46 = vld [vmem:[#allocation4 + $0x358] sm:$0xff]  ;;  %v1329_v34 = vrot.slane %v5021_v30, 7 }
 0x1e6   : > { %1150 = vmatmul.mubr.f32.vlgmr.msra.gmra.mrb[0].mxu1 %v1080_v47  ;;  %1030 = vmatprep.mubr.f32.mxu0 %v4550_v0  ;;  %v5034_v47 = vld [vmem:[#allocation3 + $0x8] sm:$0xff]  ;;  %v3977_v48 = vpack.c.bf16 %v1300_v41, %v1298_v19  ;;  %v3979_v49 = vpack.c.bf16 %v1305_v46, %v1303_v45  ;;  %v1428_v45 = vld [vmem:[#allocation4 + $0x450] sm:$0xff] }
 0x1e7   : > { %3942 = vmatpush1.bf16.msra.mxu1 %v3941_v38  ;;  %1155 = vmatprep.mubr.f32.mxu1 %v4550_v0  ;;  %v1167_v38 = vld [vmem:[#allocation3 + $0x20] sm:$0x3f]  ;;  %v1429_v19 = vld [vmem:[#allocation4 + $0x458] sm:$0xff] }
 0x1e8   : > { %3944 = vmatprep.subr.bf16.mxu1 %v3943_v43  ;;  %v1205_v43 = vsel %vm589_vm2, %v1203_v35, %v1204_v39  ;;  %v1206_v44 = vrot.slane %v1167_v38, 6  ;;  %v4005_v35 = vpack.c.bf16 %v1420_v28, %v1418_v27  ;;  %v1424_v38 = vld [vmem:[#allocation4 + $0x430] sm:$0xff]  ;;  %v1722_v27 = vld [vmem:[#allocation6 + $0x100] sm:$0xff]  ;;  %v1723_v28 = vld [vmem:[#allocation6 + $0x108] sm:$0xff] }
 0x1e9   : > { %1031 = vmatmul.mubr.f32.gmra.mrb[4].mxu0 %v957_v56  ;;  %v4009_v41 = vpack.c.bf16 %v1424_v38, %v1422_v37  ;;  %v1591_v37 = vld [vmem:[#allocation6 + $0x18] sm:$0xff] }
 0x1ea   : > { %1156 = vmatmul.mubr.f32.gmra.mrb[2].mxu1 %v1082_v57  ;;  %v1306_v57 = vld [vmem:[#allocation4 + $0x360] sm:$0xff] }
 0x1eb   : > { %3946 = vmatpush1.bf16.msra.mxu1 %v3945_v52  ;;  %1274 = vmatprep.mubr.f32.mxu1 %v4550_v0  ;;  %v1191_v0 = vld [vmem:[#allocation4 + $0x2b0] sm:$0xff]  ;;  %v1207_v52 = vsel %vm589_vm2, %v1204_v39, %v1206_v44  ;;  %v1426_v44 = vld [vmem:[#allocation4 + $0x440] sm:$0xff] }
 0x1ec   : > { %3948 = vmatprep.subr.bf16.mxu1 %v3947_v53  ;;  %v3961_v16 = vpack.c.bf16 %v1191_v0, %v1189_v13  ;;  %v1307_v53 = vld [vmem:[#allocation4 + $0x368] sm:$0xff]  ;;  %v1318_v0 = vld [vmem:[#allocation4 + $0x3c0] sm:$0xff]  ;;  %v4013_v50 = vpack.c.bf16 %v1428_v45, %v1426_v44 }
 0x1ed   : > { %v3983_v56 = vpack.c.bf16 %v1309_v54, %v1307_v53  ;;  %v1432_v53 = vld [vmem:[#allocation4 + $0x470] sm:$0xff]  ;;  %v1435_v54 = vld [vmem:[#allocation4 + $0x488] sm:$0xff]  ;;  %v1742_v45 = vld [vmem:[#allocation6 + $0x1a0] sm:$0xff] }
 0x1ee   : > { %v1609_v44 = vld [vmem:[#allocation6 + $0xa8] sm:$0xff] }
 0x1ef   : > { %3950 = vmatpush1.bf16.msra.mxu1 %v3949_v60  ;;  %v1313_v60 = vld [vmem:[#allocation4 + $0x398] sm:$0xff] }
 0x1f0   : > { %3952 = vmatprep.subr.bf16.mxu1 %v3951_v61  ;;  %v3985_v61 = vpack.c.bf16 %v1308_v58, %v1306_v57  ;;  %v3987_v62 = vpack.c.bf16 %v1313_v60, %v1311_v59  ;;  %v1434_v58 = vld [vmem:[#allocation4 + $0x480] sm:$0xff]  ;;  %v1436_v59 = vld [vmem:[#allocation4 + $0x490] sm:$0xff]  ;;  %v1439_v60 = vld [vmem:[#allocation4 + $0x4a8] sm:$0xff] }
 0x1f3   : > { %3954 = vmatpush1.bf16.msra.mxu1 %v3953_v3  ;;  %v1317_v3 = vld [vmem:[#allocation4 + $0x3b8] sm:$0xff] }
 0x1f4   : > { %3956 = vmatprep.subr.bf16.mxu1 %v3955_v4  ;;  %v3989_v4 = vpack.c.bf16 %v1312_v1, %v1310_v63  ;;  %v3991_v5 = vpack.c.bf16 %v1317_v3, %v1315_v2  ;;  %v1438_v1 = vld [vmem:[#allocation4 + $0x4a0] sm:$0xff]  ;;  %v1440_v2 = vld [vmem:[#allocation4 + $0x4b0] sm:$0xff]  ;;  %v1443_v3 = vld [vmem:[#allocation4 + $0x4c8] sm:$0xff] }
 0x1f7   : > { %3958 = vmatpush1.bf16.msra.mxu1 %v3957_v11  ;;  %v1321_v11 = vld [vmem:[#allocation4 + $0x3d8] sm:$0xff] }
 0x1f8   : > { %3960 = vmatprep.subr.bf16.mxu1 %v3959_v12  ;;  %v3993_v12 = vpack.c.bf16 %v1316_v7, %v1314_v6  ;;  %v3995_v13 = vpack.c.bf16 %v1321_v11, %v1319_v8  ;;  %v1442_v7 = vld [vmem:[#allocation4 + $0x4c0] sm:$0xff]  ;;  %v1444_v8 = vld [vmem:[#allocation4 + $0x4d0] sm:$0xff]  ;;  %v1447_v11 = vld [vmem:[#allocation4 + $0x4e8] sm:$0xff] }
 0x1fb   : > { %3962 = vmatpush1.bf16.msra.mxu1 %v3961_v16  ;;  %v1325_v16 = vld [vmem:[#allocation4 + $0x3f8] sm:$0xff] }
 0x1fc   : > { %3964 = vmatprep.subr.bf16.mxu1 %v3963_v17  ;;  %v3997_v17 = vpack.c.bf16 %v1320_v14, %v1318_v0  ;;  %v3999_v18 = vpack.c.bf16 %v1325_v16, %v1323_v15  ;;  %v1446_v14 = vld [vmem:[#allocation4 + $0x4e0] sm:$0xff]  ;;  %v1448_v15 = vld [vmem:[#allocation4 + $0x4f0] sm:$0xff] }
 0x1fd   : > { %v4033_v16 = vpack.c.bf16 %v1448_v15, %v1446_v14  ;;  %v1731_v14 = vld [vmem:[#allocation6 + $0x148] sm:$0xff] }
 0x1ff   : > { %3966 = vmatpush1.bf16.msra.mxu1 %v3965_v23  ;;  %v1421_v23 = vld [vmem:[#allocation4 + $0x418] sm:$0xff] }
 0x200   : > { %3968 = vmatprep.subr.bf16.mxu1 %v3967_v24  ;;  %v1291_v24 = vld [vmem:[#allocation3] sm:$0x80]  ;;  %v4003_v26 = vpack.c.bf16 %v1421_v23, %v1419_v22  ;;  %v1739_v22 = vld [vmem:[#allocation6 + $0x188] sm:$0xff]  ;;  %v1588_v23 = vld [vmem:[#allocation6] sm:$0xff] }
 0x201   : > { %v1328_v29 = vrot.slane %v1291_v24, 7  ;;  %v1589_v24 = vld [vmem:[#allocation6 + $0x8] sm:$0xff] }
 0x203   : > { %3970 = vmatpush1.bf16.msra.mxu1 %v3969_v31  ;;  %v1423_v31 = vld [vmem:[#allocation4 + $0x428] sm:$0xff]  ;;  %v1330_v39 = vsel %vm695_vm3, %v1328_v29, %v1329_v34  ;;  %v1606_v29 = vld [vmem:[#allocation6 + $0x90] sm:$0xff] }
 0x204   : > { %3972 = vmatprep.subr.bf16.mxu1 %v3971_v32  ;;  %v1425_v32 = vld [vmem:[#allocation4 + $0x438] sm:$0xff] }
 0x205   : > { %v4007_v36 = vpack.c.bf16 %v1425_v32, %v1423_v31  ;;  %v1607_v31 = vld [vmem:[#allocation6 + $0x98] sm:$0xff]  ;;  %v1740_v32 = vld [vmem:[#allocation6 + $0x190] sm:$0xff] }
 0x206   : > { %1275 = vmatmul.mubr.f32.vlgmr.msra.gmra.mrb[0].mxu1 %v1205_v43 }
 0x207   : > { %3974 = vmatpush1.bf16.msra.mxu1 %v3973_v40  ;;  %1280 = vmatprep.mubr.f32.mxu1 %v5034_v47  ;;  %v1331_v40 = vrot.slane %v1292_v33, 7  ;;  %v1741_v33 = vld [vmem:[#allocation6 + $0x198] sm:$0xff] }
 0x208   : > { %3976 = vmatprep.subr.bf16.mxu1 %v3975_v42  ;;  %v1427_v42 = vld [vmem:[#allocation4 + $0x448] sm:$0xff]  ;;  %v4071_v38 = vpack.c.bf16 %v1741_v33, %v1740_v32  ;;  %v1750_v32 = vld [vmem:[#allocation6 + $0x1e0] sm:$0xff] }
 0x209   : > { %v4011_v43 = vpack.c.bf16 %v1429_v19, %v1427_v42  ;;  %v1332_v46 = vsel %vm695_vm3, %v1329_v34, %v1331_v40  ;;  %v4069_v34 = vpack.c.bf16 %v1723_v28, %v1722_v27  ;;  %v1724_v40 = vld [vmem:[#allocation6 + $0x110] sm:$0xff]  ;;  %v1725_v42 = vld [vmem:[#allocation6 + $0x118] sm:$0xff] }
 0x20a   : > { %1281 = vmatmul.mubr.f32.gmra.mrb[2].mxu1 %v1207_v52  ;;  %v1430_v52 = vld [vmem:[#allocation4 + $0x460] sm:$0xff]  ;;  %v4073_v19 = vpack.c.bf16 %v1725_v42, %v1724_v40  ;;  %v1733_v27 = vld [vmem:[#allocation6 + $0x158] sm:$0xff]  ;;  %v1735_v40 = vld [vmem:[#allocation6 + $0x168] sm:$0xff] }
 0x20b   : > { %3978 = vmatpush1.bf16.msra.mxu1 %v3977_v48  ;;  %1399 = vmatprep.mubr.f32.mxu1 %v5034_v47  ;;  %v1431_v48 = vld [vmem:[#allocation4 + $0x468] sm:$0xff]  ;;  %v1618_v42 = vld [vmem:[#allocation6 + $0xf0] sm:$0xff] }
 0x20c   : > { %3980 = vmatprep.subr.bf16.mxu1 %v3979_v49  ;;  %v1433_v49 = vld [vmem:[#allocation4 + $0x478] sm:$0xff] }
 0x20d   : > { %v4015_v51 = vpack.c.bf16 %v1433_v49, %v1431_v48  ;;  %v1743_v48 = vld [vmem:[#allocation6 + $0x1a8] sm:$0xff]  ;;  %v1592_v49 = vld [vmem:[#allocation6 + $0x20] sm:$0xff] }
 0x20f   : > { %3982 = vmatpush1.bf16.msra.mxu1 %v3981_v55  ;;  %v1437_v55 = vld [vmem:[#allocation4 + $0x498] sm:$0xff] }
 0x210   : > { %3984 = vmatprep.subr.bf16.mxu1 %v3983_v56  ;;  %v4017_v56 = vpack.c.bf16 %v1432_v53, %v1430_v52  ;;  %v4019_v57 = vpack.c.bf16 %v1437_v55, %v1435_v54  ;;  %v1726_v53 = vld [vmem:[#allocation6 + $0x120] sm:$0xff]  ;;  %v1610_v54 = vld [vmem:[#allocation6 + $0xb0] sm:$0xff]  ;;  %v1611_v55 = vld [vmem:[#allocation6 + $0xb8] sm:$0xff] }
 0x213   : > { %3986 = vmatpush1.bf16.msra.mxu1 %v3985_v61  ;;  %v1441_v61 = vld [vmem:[#allocation4 + $0x4b8] sm:$0xff] }
 0x214   : > { %3988 = vmatprep.subr.bf16.mxu1 %v3987_v62  ;;  %v4021_v62 = vpack.c.bf16 %v1436_v59, %v1434_v58  ;;  %v4023_v63 = vpack.c.bf16 %v1441_v61, %v1439_v60  ;;  %v1745_v58 = vld [vmem:[#allocation6 + $0x1b8] sm:$0xff]  ;;  %v1594_v59 = vld [vmem:[#allocation6 + $0x30] sm:$0xff] }
 0x215   : > { %v1595_v60 = vld [vmem:[#allocation6 + $0x38] sm:$0xff] }
 0x217   : > { %3990 = vmatpush1.bf16.msra.mxu1 %v3989_v4  ;;  %v1445_v4 = vld [vmem:[#allocation4 + $0x4d8] sm:$0xff] }
 0x218   : > { %3992 = vmatprep.subr.bf16.mxu1 %v3991_v5  ;;  %v4025_v5 = vpack.c.bf16 %v1440_v2, %v1438_v1  ;;  %v4027_v6 = vpack.c.bf16 %v1445_v4, %v1443_v3  ;;  %v1729_v1 = vld [vmem:[#allocation6 + $0x138] sm:$0xff]  ;;  %v1612_v3 = vld [vmem:[#allocation6 + $0xc0] sm:$0xff]  ;;  %v1613_v4 = vld [vmem:[#allocation6 + $0xc8] sm:$0xff] }
 0x21b   : > { %3994 = vmatpush1.bf16.msra.mxu1 %v3993_v12  ;;  %v1449_v12 = vld [vmem:[#allocation4 + $0x4f8] sm:$0xff] }
 0x21c   : > { %3996 = vmatprep.subr.bf16.mxu1 %v3995_v13  ;;  %v4029_v13 = vpack.c.bf16 %v1444_v8, %v1442_v7  ;;  %v4031_v0 = vpack.c.bf16 %v1449_v12, %v1447_v11  ;;  %v1747_v7 = vld [vmem:[#allocation6 + $0x1c8] sm:$0xff]  ;;  %v1596_v8 = vld [vmem:[#allocation6 + $0x40] sm:$0xff] }
 0x21d   : > { %v1597_v11 = vld [vmem:[#allocation6 + $0x48] sm:$0xff] }
 0x21f   : > { %3998 = vmatpush1.bf16.msra.mxu1 %v3997_v17  ;;  %v1604_v17 = vld [vmem:[#allocation6 + $0x80] sm:$0xff] }
 0x220   : > { %4000 = vmatprep.subr.bf16.mxu1 %v3999_v18  ;;  %v1605_v18 = vld [vmem:[#allocation6 + $0x88] sm:$0xff] }
 0x221   : > { %v4035_v21 = vpack.c.bf16 %v1605_v18, %v1604_v17  ;;  %v1615_v17 = vld [vmem:[#allocation6 + $0xd8] sm:$0xff]  ;;  %v1748_v18 = vld [vmem:[#allocation6 + $0x1d0] sm:$0xff] }
 0x223   : > { %4002 = vmatpush1.bf16.msra.mxu1 %v4001_v25  ;;  %v4067_v25 = vpack.c.bf16 %v1739_v22, %v1738_v20  ;;  %4036 = vmatprep.subr.bf16.mxu0 %v4035_v21  ;;  %v1749_v21 = vld [vmem:[#allocation6 + $0x1d8] sm:$0xff]  ;;  %v1598_v22 = vld [vmem:[#allocation6 + $0x50] sm:$0xff] }
 0x224   : > { %4004 = vmatprep.subr.bf16.mxu1 %v4003_v26  ;;  %v4037_v26 = vpack.c.bf16 %v1589_v24, %v1588_v23  ;;  %v1599_v23 = vld [vmem:[#allocation6 + $0x58] sm:$0xff]  ;;  %v4087_v24 = vpack.c.bf16 %v1749_v21, %v1748_v18 }
 0x226   : > { %1400 = vmatmul.mubr.f32.vlgmr.msra.gmra.mrb[0].mxu1 %v1330_v39  ;;  %4038 = vmatpush3.bf16.msra.mxu0 %v4037_v26  ;;  %v1732_v26 = vld [vmem:[#allocation6 + $0x150] sm:$0xff] }
 0x227   : > { %4006 = vmatpush1.bf16.msra.mxu1 %v4005_v35  ;;  %1405 = vmatprep.mubr.f32.mxu1 %v5034_v47  ;;  %v4039_v35 = vpack.c.bf16 %v1607_v31, %v1606_v29  ;;  %v4089_v28 = vpack.c.bf16 %v1733_v27, %v1732_v26  ;;  %v1616_v29 = vld [vmem:[#allocation6 + $0xe0] sm:$0xff]  ;;  %v1617_v31 = vld [vmem:[#allocation6 + $0xe8] sm:$0xff] }
 0x228   : > { %4008 = vmatprep.subr.bf16.mxu1 %v4007_v36  ;;  %v1590_v36 = vld [vmem:[#allocation6 + $0x10] sm:$0xff]  ;;  %v4059_v33 = vpack.c.bf16 %v1617_v31, %v1616_v29 }
 0x229   : > { %v4041_v39 = vpack.c.bf16 %v1591_v37, %v1590_v36  ;;  %4040 = vmatprep.subr.bf16.mxu0 %v4039_v35  ;;  %v1600_v35 = vld [vmem:[#allocation6 + $0x60] sm:$0xff]  ;;  %v1601_v36 = vld [vmem:[#allocation6 + $0x68] sm:$0xff] }
 0x22a   : > { %1406 = vmatmul.mubr.f32.gmra.mrb[2].mxu1 %v1332_v46 }
 0x22b   : > { %4010 = vmatpush1.bf16.msra.mxu1 %v4009_v41  ;;  %1514 = vmatprep.mubr.f32.mxu1 %v5034_v47  ;;  %v1416_v41 = vld [vmem:[#allocation3 + $0x20] sm:$0xff] }
 0x22c   : > { %4012 = vmatprep.subr.bf16.mxu1 %v4011_v43  ;;  %4042 = vmatpush3.bf16.msra.mxu0 %v4041_v39  ;;  %v1608_v43 = vld [vmem:[#allocation6 + $0xa0] sm:$0xff] }
 0x22d   : > { %v4043_v46 = vpack.c.bf16 %v1609_v44, %v1608_v43  ;;  %v1734_v39 = vld [vmem:[#allocation6 + $0x160] sm:$0xff]  ;;  %v1752_v43 = vld [vmem:[#allocation6 + $0x1f0] sm:$0xff]  ;;  %v1753_v44 = vld [vmem:[#allocation6 + $0x1f8] sm:$0xff] }
 0x22f   : > { %4014 = vmatpush1.bf16.msra.mxu1 %v4013_v50  ;;  %v1593_v50 = vld [vmem:[#allocation6 + $0x28] sm:$0xff]  ;;  %4044 = vmatprep.subr.bf16.mxu0 %v4043_v46  ;;  %v4095_v46 = vpack.c.bf16 %v1753_v44, %v1752_v43 }
 0x230   : > { %4016 = vmatprep.subr.bf16.mxu1 %v4015_v51  ;;  %v4075_v51 = vpack.c.bf16 %v1743_v48, %v1742_v45  ;;  %v4045_v52 = vpack.c.bf16 %v1593_v50, %v1592_v49  ;;  %v1602_v48 = vld [vmem:[#allocation6 + $0x70] sm:$0xff]  ;;  %v1603_v49 = vld [vmem:[#allocation6 + $0x78] sm:$0xff] }
 0x231   : > { %v1736_v50 = vld [vmem:[#allocation6 + $0x170] sm:$0xff] }
 0x232   : > { %4046 = vmatpush3.bf16.msra.mxu0 %v4045_v52  ;;  %v1737_v52 = vld [vmem:[#allocation6 + $0x178] sm:$0xff] }
 0x233   : > { %4018 = vmatpush1.bf16.msra.mxu1 %v4017_v56  ;;  %v1744_v56 = vld [vmem:[#allocation6 + $0x1b0] sm:$0xff] }
 0x234   : > { %4020 = vmatprep.subr.bf16.mxu1 %v4019_v57  ;;  %v4047_v57 = vpack.c.bf16 %v1611_v55, %v1610_v54  ;;  %v4079_v61 = vpack.c.bf16 %v1745_v58, %v1744_v56  ;;  %v2004_v54 = vld [vmem:[#allocation6 + $0x380] sm:$0xff]  ;;  %v2005_v56 = vld [vmem:[#allocation6 + $0x388] sm:$0xff] }
 0x236   : > { %4048 = vmatprep.subr.bf16.mxu0 %v4047_v57  ;;  %v4131_v57 = vpack.c.bf16 %v2005_v56, %v2004_v54  ;;  %v5065_v54 = vld [vmem:[#allocation6 + $0x2a8] sm:$0xff] }
 0x237   : > { %4022 = vmatpush1.bf16.msra.mxu1 %v4021_v62  ;;  %v4049_v62 = vpack.c.bf16 %v1595_v60, %v1594_v59 }
 0x238   : > { %4024 = vmatprep.subr.bf16.mxu1 %v4023_v63  ;;  %v1728_v63 = vld [vmem:[#allocation6 + $0x130] sm:$0xff] }
 0x239   : > { %v4081_v2 = vpack.c.bf16 %v1729_v1, %v1728_v63  ;;  %4050 = vmatpush3.bf16.msra.mxu0 %v4049_v62  ;;  %v2982_v62 = vld [vmem:[%s5151_s5 + $0x2] sm:$0x3]  ;;  %v911_v63 = vsub.s32 1, %v4999_v9 }
 0x23a   : > { %v908_v1 = vrot.slane %v2982_v62, %v5002_v10 }
 0x23b   : > { %4026 = vmatpush1.bf16.msra.mxu1 %v4025_v5  ;;  %v1746_v5 = vld [vmem:[#allocation6 + $0x1c0] sm:$0xff] }
 0x23c   : > { %4028 = vmatprep.subr.bf16.mxu1 %v4027_v6  ;;  %v4051_v6 = vpack.c.bf16 %v1613_v4, %v1612_v3  ;;  %v4083_v12 = vpack.c.bf16 %v1747_v7, %v1746_v5 }
 0x23e   : > { %4052 = vmatprep.subr.bf16.mxu0 %v4051_v6 }
 0x23f   : > { %4030 = vmatpush1.bf16.msra.mxu1 %v4029_v13  ;;  %v4053_v13 = vpack.c.bf16 %v1597_v11, %v1596_v8  ;;  %v1541_v8 = vpop.permute.xlu1 %1540 }
 0x240   : > { %4032 = vmatprep.subr.bf16.mxu1 %v4031_v0  ;;  %v1730_v0 = vld [vmem:[#allocation6 + $0x140] sm:$0xff] }
 0x241   : > { %v4085_v15 = vpack.c.bf16 %v1731_v14, %v1730_v0  ;;  %4054 = vmatpush3.bf16.msra.mxu0 %v4053_v13 }
 0x243   : > { %4034 = vmatpush1.bf16.msra.mxu1 %v4033_v16  ;;  %v1614_v16 = vld [vmem:[#allocation6 + $0xd0] sm:$0xff] }
 0x244   : > { %4068 = vmatprep.subr.bf16.mxu1 %v4067_v25  ;;  %v4055_v20 = vpack.c.bf16 %v1615_v17, %v1614_v16  ;;  %v4057_v25 = vpack.c.bf16 %v1599_v23, %v1598_v22  ;;  %v1546_v23 = vpop.permute.xlu1 %1545 }
 0x246   : > { %1515 = vmatmul.mubr.f32.vlgmr.msra.gmra.mrb[0].mxu1 %v5021_v30  ;;  %v1727_v30 = vld [vmem:[#allocation6 + $0x128] sm:$0xff]  ;;  %4056 = vmatprep.subr.bf16.mxu0 %v4055_v20 }
 0x247   : > { %1520 = vmatprep.mubr.f32.mxu1 %v5034_v47  ;;  %4070 = vmatpush3.bf16.msra.mxu1 %v4069_v34  ;;  %v4077_v47 = vpack.c.bf16 %v1727_v30, %v1726_v53  ;;  %v1751_v34 = vld [vmem:[#allocation6 + $0x1e8] sm:$0xff]  ;;  %v4097_v53 = vpack.c.bf16 %v1737_v52, %v1736_v50  ;;  %v1871_v30 = vld [vmem:[#allocation6 + $0x280] sm:$0xff] }
 0x248   : > { %4072 = vmatprep.subr.bf16.mxu1 %v4071_v38  ;;  %4058 = vmatpush3.bf16.msra.mxu0 %v4057_v25  ;;  %v4091_v37 = vpack.c.bf16 %v1751_v34, %v1750_v32  ;;  %v4061_v38 = vpack.c.bf16 %v1601_v36, %v1600_v35  ;;  %v1856_v34 = vld [vmem:[#allocation6 + $0x208] sm:$0xff]  ;;  %v1988_v35 = vld [vmem:[#allocation6 + $0x300] sm:$0xff] }
 0x249   : > { %4060 = vmatprep.subr.bf16.mxu0 %v4059_v33  ;;  %v1855_v33 = vld [vmem:[#allocation6 + $0x200] sm:$0xff]  ;;  %v1989_v36 = vld [vmem:[#allocation6 + $0x308] sm:$0xff] }
 0x24a   : > { %1521 = vmatmul.mubr.f32.gmra.mrb[2].mxu1 %v1416_v41  ;;  %v1619_v41 = vld [vmem:[#allocation6 + $0xf8] sm:$0xff] }
 0x24b   : > { %4074 = vmatpush3.bf16.msra.mxu1 %v4073_v19  ;;  %v4093_v19 = vpack.c.bf16 %v1735_v40, %v1734_v39  ;;  %v4063_v45 = vpack.c.bf16 %v1619_v41, %v1618_v42  ;;  %v2006_v39 = vld [vmem:[#allocation6 + $0x390] sm:$0xff] }
 0x24c   : > { %4076 = vmatprep.subr.bf16.mxu1 %v4075_v51  ;;  %4062 = vmatpush3.bf16.msra.mxu0 %v4061_v38  ;;  %v4065_v51 = vpack.c.bf16 %v1603_v49, %v1602_v48  ;;  %v1874_v38 = vld [vmem:[#allocation6 + $0x298] sm:$0xff] }
 0x24d   : > { %4064 = vmatprep.subr.bf16.mxu0 %v4063_v45  ;;  %v5059_v48 = vld [vmem:[#allocation6 + $0x218] sm:$0xff] }
 0x24f   : > { %4078 = vmatpush3.bf16.msra.mxu1 %v4077_v47  ;;  %v1872_v47 = vld [vmem:[#allocation6 + $0x288] sm:$0xff] }
 0x250   : > { %4080 = vmatprep.subr.bf16.mxu1 %v4079_v61  ;;  %4066 = vmatpush3.bf16.msra.mxu0 %v4065_v51  ;;  %v4099_v55 = vpack.c.bf16 %v1872_v47, %v1871_v30  ;;  %v1991_v30 = vld [vmem:[#allocation6 + $0x318] sm:$0xff]  ;;  %v5063_v47 = vld [vmem:[#allocation6 + $0x2a0] sm:$0xff] }
 0x252   : > { %4100 = vmatprep.subr.bf16.mxu0 %v4099_v55 }
 0x253   : > { %4082 = vmatpush3.bf16.msra.mxu1 %v4081_v2  ;;  %v912_v2 = vrot.slane %v2982_v62, %v911_v63 }
 0x254   : > { %4084 = vmatprep.subr.bf16.mxu1 %v4083_v12 }
 0x257   : > { %4086 = vmatpush3.bf16.msra.mxu1 %v4085_v15 }
 0x258   : > { %4088 = vmatprep.subr.bf16.mxu1 %v4087_v24 }
 0x25b   : > { %4090 = vmatpush3.bf16.msra.mxu1 %v4089_v28 }
 0x25c   : > { %4092 = vmatprep.subr.bf16.mxu1 %v4091_v37  ;;  %v1873_v37 = vld [vmem:[#allocation6 + $0x290] sm:$0xff] }
 0x25f   : > { %4094 = vmatpush3.bf16.msra.mxu1 %v4093_v19  ;;  %v2007_v19 = vld [vmem:[#allocation6 + $0x398] sm:$0xff] }
 0x260   : > { %4096 = vmatprep.subr.bf16.mxu1 %v4095_v46  ;;  %v5057_v46 = vld [vmem:[#allocation6 + $0x210] sm:$0xff] }
 0x263   : > { %4098 = vmatpush3.bf16.msra.mxu1 %v4097_v53  ;;  %v1990_v53 = vld [vmem:[#allocation6 + $0x310] sm:$0xff] }
 0x264   : > { %4132 = vmatprep.subr.bf16.mxu1 %v4131_v57  ;;  %v4101_v57 = vpack.c.bf16 %v1856_v34, %v1855_v33 }
 0x2b8   : > { %v1026_v58 = vpop.f32.mrb[2].mxu0 }
 0x2b9   : > { %v1028_v59 = vpop.f32.mrb[3].mxu0  ;;  %v1037_v3 = vadd.f32 %v1026_v58, %v908_v1  ;;  %v4133_v58 = vpack.c.bf16 %v1989_v36, %v1988_v35  ;;  %v1878_v35 = vld [vmem:[#allocation6 + $0x2b8] sm:$0xff]  ;;  %v2010_v36 = vld [vmem:[#allocation6 + $0x3b0] sm:$0xff] }
 0x2ba   : > { %v1038_v4 = vadd.f32 %v1028_v59, %v912_v2 }
 0x2bc   : > { %v1032_v60 = vpop.f32.mrb[4].mxu0 }
 0x2bd   : > { %v1034_v61 = vpop.f32.mrb[5].mxu0  ;;  %v1039_v12 = vadd.f32 %v1032_v60, %v908_v1  ;;  %v5069_v60 = vld [vmem:[#allocation6 + $0x3a0] sm:$0xff]  ;;  %v4103_v1 = vpack.c.bf16 %v1874_v38, %v1873_v37  ;;  %v2011_v37 = vld [vmem:[#allocation6 + $0x3b8] sm:$0xff] }
 0x2be   : > { %v1040_v0 = vadd.f32 %v1034_v61, %v912_v2  ;;  %v5071_v61 = vld [vmem:[#allocation6 + $0x3a8] sm:$0xff]  ;;  %v4135_v2 = vpack.c.bf16 %v2007_v19, %v2006_v39  ;;  %v1861_v19 = vld [vmem:[#allocation6 + $0x230] sm:$0xff] }
 0x319   : > { %v1516_v5 = vpop.f32.mrb[0].mxu1 }
 0x31a   : > { %v4358_v6 = vadd.f32 %v1516_v5, %v1037_v3  ;;  %v1518_v7 = vpop.f32.mrb[1].mxu1 }
 0x31b   : > { %v4360_v11 = vadd.f32 %v1518_v7, %v1038_v4 }
 0x31c   : > { %v1531_v13 = vmax.f32 %v4358_v6, 0.0 }
 0x31d   : > { %v1532_v14 = vmax.f32 %v4360_v11, 0.0  ;;  %v1522_v15 = vpop.f32.mrb[2].mxu1 }
 0x31e   : > { %v1548_v16 = vmul.f32 %v1541_v8, %v1531_v13  ;;  %v4362_v17 = vadd.f32 %v1522_v15, %v1039_v12  ;;  %v1524_v18 = vpop.f32.mrb[3].mxu1  ;;  %v4105_v15 = vpack.c.bf16 %v5059_v48, %v5057_v46  ;;  %v1995_v46 = vld [vmem:[#allocation6 + $0x338] sm:$0xff]  ;;  %v1879_v48 = vld [vmem:[#allocation6 + $0x2c0] sm:$0xff] }
 0x31f   : > { %v1549_v20 = vmul.f32 %v1541_v8, %v1532_v14  ;;  %v4364_v9 = vadd.f32 %v1524_v18, %v1040_v0 }
 0x320   : > { %v1556_v21 = vrot.slane %v1548_v16, 4  ;;  %v1533_v22 = vmax.f32 %v4362_v17, 0.0  ;;  %v4137_v16 = vpack.c.bf16 %v1991_v30, %v1990_v53  ;;  %v1863_v30 = vld [vmem:[#allocation6 + $0x240] sm:$0xff] }
 0x321   : > { %v1557_v24 = vrot.slane %v1549_v20, 4  ;;  %v1534_v25 = vmax.f32 %v4364_v9, 0.0  ;;  %v4107_v20 = vpack.c.bf16 %v5065_v54, %v5063_v47  ;;  %v1859_v9 = vld [vmem:[#allocation6 + $0x220] sm:$0xff]  ;;  %v1864_v47 = vld [vmem:[#allocation6 + $0x248] sm:$0xff] }
 0x322   : > { %1568 = vst [vmem:[#allocation2] sm:$0xf0] %v1556_v21  ;;  %v1550_v26 = vmul.f32 %v1546_v23, %v1533_v22 }
 0x323   : > { %1569 = vst [vmem:[#allocation2 + $0x8] sm:$0xf0] %v1557_v24  ;;  %v1551_v27 = vmul.f32 %v1546_v23, %v1534_v25  ;;  %v1992_v25 = vld [vmem:[#allocation6 + $0x320] sm:$0xff] }
 0x324   : > { %v1558_v28 = vrot.slane %v1550_v26, 4  ;;  %v1993_v26 = vld [vmem:[#allocation6 + $0x328] sm:$0xff] }
 0x325   : > { %v1560_v29 = vrot.slane %v1551_v27, 4  ;;  %v1877_v27 = vld [vmem:[#allocation6 + $0x2b0] sm:$0xff] }
 0x326   : > { %v5052_v31 = vsel %vm339_vm0, %v1556_v21, %v1558_v28  ;;  %1572 = vst [vmem:[#allocation2 + $0x20] sm:$0xf] %v1558_v28  ;;  %v1860_v21 = vld [vmem:[#allocation6 + $0x228] sm:$0xff] }
 0x327   : > { %v5055_v32 = vsel %vm339_vm0, %v1557_v24, %v1560_v29  ;;  %1573 = vst [vmem:[#allocation2 + $0x28] sm:$0xf] %v1560_v29  ;;  %v1627_v55 = vrot.slane %v5052_v31, 4  ;;  %v1760_v56 = vrot.slane %v5052_v31, 3  ;;  %v4139_v24 = vpack.c.bf16 %v5071_v61, %v5069_v60  ;;  %v2014_v60 = vld [vmem:[#allocation6 + $0x3d0] sm:$0xff]  ;;  %v2015_v61 = vld [vmem:[#allocation6 + $0x3d8] sm:$0xff] }
 0x328   : > { %v1630_v50 = vrot.slane %v5055_v32, 4  ;;  %v1763_v52 = vrot.slane %v5055_v32, 3  ;;  %v1896_v33 = vrot.slane %v5055_v32, 2  ;;  %v2029_v34 = vrot.slane %v5055_v32, 1 }
 0x329   : > { %v1582_v40 = vld [vmem:[#allocation2] sm:$0xf0]  ;;  %v4109_v38 = vpack.c.bf16 %v1860_v21, %v1859_v9  ;;  %v1885_v9 = vld [vmem:[#allocation6 + $0x2f0] sm:$0xff]  ;;  %v1886_v21 = vld [vmem:[#allocation6 + $0x2f8] sm:$0xff] }
 0x32a   : > { %v1717_v42 = vld [vmem:[#allocation2] sm:$0xf8]  ;;  %v1583_v41 = vld [vmem:[#allocation2 + $0x8] sm:$0xf0]  ;;  %v1626_v44 = vrot.slane %v1582_v40, 4 }
 0x32b   : > { %v1718_v43 = vld [vmem:[#allocation2 + $0x8] sm:$0xf8]  ;;  %v1759_v45 = vrot.slane %v1717_v42, 3  ;;  %v1629_v49 = vrot.slane %v1583_v41, 4  ;;  %v4141_v42 = vpack.c.bf16 %v1993_v26, %v1992_v25  ;;  %v1862_v41 = vld [vmem:[#allocation6 + $0x238] sm:$0xff]  ;;  %v1869_v26 = vld [vmem:[#allocation6 + $0x270] sm:$0xff] }
 0x32c   : > { %v1762_v51 = vrot.slane %v1718_v43, 3  ;;  %v1851_v59 = vld [vmem:[#allocation2 + $0x8] sm:$0xfc]  ;;  %v1628_v6 = vsel %vm339_vm0, %v1626_v44, %v1627_v55  ;;  %v4111_v43 = vpack.c.bf16 %v1878_v35, %v1877_v27  ;;  %v4143_v44 = vpack.c.bf16 %v2011_v37, %v2010_v36  ;;  %v2002_v35 = vld [vmem:[#allocation6 + $0x370] sm:$0xff]  ;;  %v2003_v36 = vld [vmem:[#allocation6 + $0x378] sm:$0xff] }
 0x32d   : > { %v1631_v62 = vsel %vm339_vm0, %v1629_v49, %v1630_v50  ;;  %v1586_v3 = vld [vmem:[#allocation2 + $0x20] sm:$0xf]  ;;  %v1984_v5 = vld [vmem:[#allocation2 + $0x8] sm:$0xfe]  ;;  %v1761_v7 = vsel %vm1758_vm4, %v1759_v45, %v1760_v56  ;;  %v1895_v17 = vrot.slane %v1851_v59, 2  ;;  %v1994_v45 = vld [vmem:[#allocation6 + $0x330] sm:$0xff]  ;;  %v4127_v27 = vpack.c.bf16 %v1886_v21, %v1885_v9 }
 0x32e   : > { %v1764_v63 = vsel %vm1758_vm4, %v1762_v51, %v1763_v52  ;;  %v1719_v4 = vld [vmem:[#allocation2 + $0x20] sm:$0x7]  ;;  %1704 = vmatprep.mubr.f32.mxu0 %v1631_v62  ;;  %v1587_v8 = vld [vmem:[#allocation2 + $0x28] sm:$0xf]  ;;  %v1632_v12 = vrot.slane %v1586_v3, 4  ;;  %v2028_v18 = vrot.slane %v1984_v5, 1  ;;  %v4145_v53 = vpack.c.bf16 %v1995_v46, %v1994_v45 }
 0x32f   : > { %1837 = vmatprep.mubr.f32.mxu1 %v1764_v63  ;;  %v1720_v11 = vld [vmem:[#allocation2 + $0x28] sm:$0x7]  ;;  %v1765_v13 = vrot.slane %v1719_v4, 3  ;;  %1705 = vmatmul.mubr.f32.vlgmr.msra.gmra.mrb[6].mxu0 %v1628_v6  ;;  %v1634_v0 = vrot.slane %v1587_v8, 4  ;;  %v1897_v39 = vsel %vm1891_vm5, %v1895_v17, %v1896_v33  ;;  %v1882_v59 = vld [vmem:[#allocation6 + $0x2d8] sm:$0xff]  ;;  %v4117_v62 = vpack.c.bf16 %v1864_v47, %v1863_v30  ;;  %v1998_v5 = vld [vmem:[#allocation6 + $0x350] sm:$0xff] }
 0x330   : > { %1838 = vmatmul.mubr.f32.vlgmr.msra.gmra.mrb[4].mxu1 %v1761_v7  ;;  %v1767_v14 = vrot.slane %v1720_v11, 3  ;;  %4102 = vmatpush3.bf16.msra.mxu0 %v4101_v57  ;;  %v1633_v28 = vsel %vm339_vm0, %v1627_v55, %v1632_v12  ;;  %v2030_v40 = vsel %vm2024_vm6, %v2028_v18, %v2029_v34  ;;  %v1880_v49 = vld [vmem:[#allocation6 + $0x2c8] sm:$0xff]  ;;  %v4151_v4 = vpack.c.bf16 %v2015_v61, %v2014_v60  ;;  %v1999_v6 = vld [vmem:[#allocation6 + $0x358] sm:$0xff]  ;;  %v1883_v7 = vld [vmem:[#allocation6 + $0x2e0] sm:$0xff] }
 0x331   : > { %4134 = vmatpush3.bf16.msra.mxu1 %v4133_v58  ;;  %v1635_v22 = vsel %vm339_vm0, %v1630_v50, %v1634_v0  ;;  %4104 = vmatprep.subr.bf16.mxu0 %v4103_v1  ;;  %v1766_v29 = vsel %vm1758_vm4, %v1760_v56, %v1765_v13  ;;  %v2012_v50 = vld [vmem:[#allocation6 + $0x3c0] sm:$0xff]  ;;  %v2013_v51 = vld [vmem:[#allocation6 + $0x3c8] sm:$0xff]  ;;  %v4115_v54 = vpack.c.bf16 %v1880_v49, %v1879_v48  ;;  %v1881_v58 = vld [vmem:[#allocation6 + $0x2d0] sm:$0xff] }
 0x332   : > { %v1768_v23 = vsel %vm1758_vm4, %v1763_v52, %v1767_v14  ;;  %4136 = vmatprep.subr.bf16.mxu1 %v4135_v2  ;;  %1709 = vmatprep.mubr.f32.mxu0 %v1635_v22  ;;  %v4113_v52 = vpack.c.bf16 %v1862_v41, %v1861_v19  ;;  %v4147_v55 = vpack.c.bf16 %v2013_v51, %v2012_v50  ;;  %v1996_v56 = vld [vmem:[#allocation6 + $0x340] sm:$0xff]  ;;  %v1997_v57 = vld [vmem:[#allocation6 + $0x348] sm:$0xff]  ;;  %v1865_v1 = vld [vmem:[#allocation6 + $0x250] sm:$0xff] }
 0x333   : > { %1842 = vmatprep.mubr.f32.mxu1 %v1768_v23  ;;  %1710 = vmatmul.mubr.f32.gmra.mrb[8].mxu0 %v1633_v28  ;;  %v4149_v63 = vpack.c.bf16 %v1997_v57, %v1996_v56  ;;  %v1866_v2 = vld [vmem:[#allocation6 + $0x258] sm:$0xff]  ;;  %v4119_v3 = vpack.c.bf16 %v1882_v59, %v1881_v58  ;;  %v1884_v8 = vld [vmem:[#allocation6 + $0x2e8] sm:$0xff]  ;;  %v2016_v11 = vld [vmem:[#allocation6 + $0x3e0] sm:$0xff]  ;;  %v4153_v0 = vpack.c.bf16 %v1999_v6, %v1998_v5 }
 0x334   : > { %1843 = vmatmul.mubr.f32.gmra.mrb[6].mxu1 %v1766_v29  ;;  %4106 = vmatpush3.bf16.msra.mxu0 %v4105_v15  ;;  %v2017_v12 = vld [vmem:[#allocation6 + $0x3e8] sm:$0xff]  ;;  %v4121_v13 = vpack.c.bf16 %v1866_v2, %v1865_v1  ;;  %v1867_v14 = vld [vmem:[#allocation6 + $0x260] sm:$0xff]  ;;  %v2018_v22 = vld [vmem:[#allocation6 + $0x3f0] sm:$0xff]  ;;  %v4161_v19 = vpack.c.bf16 %v2003_v36, %v2002_v35 }
 0x335   : > { %4138 = vmatpush3.bf16.msra.mxu1 %v4137_v16  ;;  %1970 = vmatprep.mubr.f32.mxu0 %v1897_v39  ;;  %v1868_v15 = vld [vmem:[#allocation6 + $0x268] sm:$0xff]  ;;  %v4123_v16 = vpack.c.bf16 %v1884_v8, %v1883_v7  ;;  %v4155_v17 = vpack.c.bf16 %v2017_v12, %v2016_v11  ;;  %v2000_v18 = vld [vmem:[#allocation6 + $0x360] sm:$0xff]  ;;  %v2019_v23 = vld [vmem:[#allocation6 + $0x3f8] sm:$0xff] }
 0x336   : > { %2103 = vmatprep.mubr.f32.mxu1 %v2030_v40  ;;  %4108 = vmatprep.subr.bf16.mxu0 %v4107_v20  ;;  %v2001_v20 = vld [vmem:[#allocation6 + $0x368] sm:$0xff]  ;;  %v4159_v28 = vpack.c.bf16 %v2019_v23, %v2018_v22  ;;  %v1870_v29 = vld [vmem:[#allocation6 + $0x278] sm:$0xff]  ;;  %v2137_v37 = vld [vmem:[#allocation6 + $0x480] sm:$0xff] }
 0x337   : > { %4140 = vmatprep.subr.bf16.mxu1 %v4139_v24  ;;  %v4125_v24 = vpack.c.bf16 %v1868_v15, %v1867_v14  ;;  %v4157_v25 = vpack.c.bf16 %v2001_v20, %v2000_v18  ;;  %v1850_v39 = vld [vmem:[#allocation2] sm:$0xfc]  ;;  %v1853_v41 = vld [vmem:[#allocation2 + $0x28] sm:$0x3]  ;;  %v2139_v50 = vld [vmem:[#allocation6 + $0x490] sm:$0xff] }
 0x338   : > { %4110 = vmatpush3.bf16.msra.mxu0 %v4109_v38  ;;  %v2138_v38 = vld [vmem:[#allocation6 + $0x488] sm:$0xff]  ;;  %v1983_v40 = vld [vmem:[#allocation2] sm:$0xfe]  ;;  %v1892_v46 = vrot.slane %v1850_v39, 2  ;;  %v2140_v51 = vld [vmem:[#allocation6 + $0x498] sm:$0xff] }
 0x339   : > { %4142 = vmatpush3.bf16.msra.mxu1 %v4141_v42  ;;  %4112 = vmatprep.subr.bf16.mxu0 %v4111_v43  ;;  %v4129_v42 = vpack.c.bf16 %v1870_v29, %v1869_v26  ;;  %v1986_v43 = vld [vmem:[#allocation2 + $0x28] sm:$0x1]  ;;  %v2121_v45 = vld [vmem:[#allocation6 + $0x400] sm:$0xff]  ;;  %v2025_v48 = vrot.slane %v1983_v40, 1  ;;  %v4167_v57 = vpack.c.bf16 %v2140_v51, %v2139_v50  ;;  %v2127_v15 = vld [vmem:[#allocation6 + $0x430] sm:$0xff] }
 0x33a   : > { %4144 = vmatprep.subr.bf16.mxu1 %v4143_v44  ;;  %v4163_v44 = vpack.c.bf16 %v2138_v38, %v2137_v37  ;;  %v2122_v49 = vld [vmem:[#allocation6 + $0x408] sm:$0xff]  ;;  %v1852_v30 = vld [vmem:[#allocation2 + $0x20] sm:$0x3]  ;;  %v2147_v23 = vld [vmem:[#allocation6 + $0x4d0] sm:$0xff] }
 0x33b   : > { %v1985_v47 = vld [vmem:[#allocation2 + $0x20] sm:$0x1]  ;;  %v4165_v56 = vpack.c.bf16 %v2122_v49, %v2121_v45  ;;  %v1898_v60 = vrot.slane %v1852_v30, 2  ;;  %v2126_v12 = vld [vmem:[#allocation6 + $0x428] sm:$0xff]  ;;  %v2151_v40 = vld [vmem:[#allocation6 + $0x4f0] sm:$0xff] }
 0x33c   : > { %4114 = vmatpush3.bf16.msra.mxu0 %v4113_v52  ;;  %v1900_v52 = vrot.slane %v1853_v41, 2  ;;  %v2031_v61 = vrot.slane %v1985_v47, 1  ;;  %v2125_v11 = vld [vmem:[#allocation6 + $0x420] sm:$0xff]  ;;  %v2146_v18 = vld [vmem:[#allocation6 + $0x4c8] sm:$0xff]  ;;  %v2377_v30 = vld [vmem:[#allocation8 + $0x90] sm:$0xff] }
 0x33d   : > { %4146 = vmatpush3.bf16.msra.mxu1 %v4145_v53  ;;  %4116 = vmatprep.subr.bf16.mxu0 %v4115_v54  ;;  %v2033_v53 = vrot.slane %v1986_v43, 1  ;;  %v1893_v54 = vrot.slane %v5052_v31, 2  ;;  %v2129_v21 = vld [vmem:[#allocation6 + $0x440] sm:$0xff]  ;;  %v2130_v22 = vld [vmem:[#allocation6 + $0x448] sm:$0xff]  ;;  %v2135_v43 = vld [vmem:[#allocation6 + $0x470] sm:$0xff] }
 0x33e   : > { %4148 = vmatprep.subr.bf16.mxu1 %v4147_v55  ;;  %v2026_v55 = vrot.slane %v5052_v31, 1  ;;  %v1901_v1 = vsel %vm1891_vm5, %v1896_v33, %v1900_v52  ;;  %v2117_v33 = vld [vmem:[#allocation2 + $0x8] sm:$0xff]  ;;  %v2149_v29 = vld [vmem:[#allocation6 + $0x4e0] sm:$0xff]  ;;  %v2378_v47 = vld [vmem:[#allocation8 + $0x98] sm:$0xff] }
 0x33f   : > { %v1894_v58 = vsel %vm1891_vm5, %v1892_v46, %v1893_v54  ;;  %v2034_v2 = vsel %vm2024_vm6, %v2029_v34, %v2033_v53  ;;  %v1899_v6 = vsel %vm1891_vm5, %v1893_v54, %v1898_v60  ;;  %v4173_v34 = vpack.c.bf16 %v2126_v12, %v2125_v11  ;;  %v2150_v35 = vld [vmem:[#allocation6 + $0x4e8] sm:$0xff]  ;;  %v2133_v38 = vld [vmem:[#allocation6 + $0x460] sm:$0xff] }
 0x340   : > { %4118 = vmatpush3.bf16.msra.mxu0 %v4117_v62  ;;  %v2027_v59 = vsel %vm2024_vm6, %v2025_v48, %v2026_v55  ;;  %v2123_v62 = vld [vmem:[#allocation6 + $0x410] sm:$0xff]  ;;  %v2032_v7 = vsel %vm2024_vm6, %v2026_v55, %v2031_v61  ;;  %v4187_v37 = vpack.c.bf16 %v2150_v35, %v2149_v29  ;;  %v2134_v39 = vld [vmem:[#allocation6 + $0x468] sm:$0xff]  ;;  %v2116_v46 = vld [vmem:[#allocation2] sm:$0xff]  ;;  %v4231_v54 = vpack.c.bf16 %v2378_v47, %v2377_v30 }
 0x341   : > { %4150 = vmatpush3.bf16.msra.mxu1 %v4149_v63  ;;  %4120 = vmatprep.subr.bf16.mxu0 %v4119_v3  ;;  %v2124_v63 = vld [vmem:[#allocation6 + $0x418] sm:$0xff]  ;;  %v2141_v3 = vld [vmem:[#allocation6 + $0x4a0] sm:$0xff]  ;;  %v2376_v49 = vld [vmem:[#allocation8 + $0x88] sm:$0xff] }
 0x342   : > { %4152 = vmatprep.subr.bf16.mxu1 %v4151_v4  ;;  %v2142_v4 = vld [vmem:[#allocation6 + $0x4a8] sm:$0xff]  ;;  %v4169_v5 = vpack.c.bf16 %v2124_v63, %v2123_v62  ;;  %v2375_v48 = vld [vmem:[#allocation8 + $0x80] sm:$0xff]  ;;  %v2271_v55 = vld [vmem:[#allocation8 + $0x10] sm:$0xff] }
 0x343   : > { %v4171_v8 = vpack.c.bf16 %v2142_v4, %v2141_v3  ;;  %v2269_v50 = vld [vmem:[#allocation8] sm:$0xff]  ;;  %v4227_v51 = vpack.c.bf16 %v2376_v49, %v2375_v48  ;;  %v2270_v52 = vld [vmem:[#allocation8 + $0x8] sm:$0xff]  ;;  %v2381_v62 = vld [vmem:[#allocation8 + $0xb0] sm:$0xff] }
 0x344   : > { %4122 = vmatpush3.bf16.msra.mxu0 %v4121_v13  ;;  %v2143_v13 = vld [vmem:[#allocation6 + $0x4b0] sm:$0xff]  ;;  %v4195_v53 = vpack.c.bf16 %v2270_v52, %v2269_v50  ;;  %v2274_v60 = vld [vmem:[#allocation8 + $0x28] sm:$0xff]  ;;  %v2382_v63 = vld [vmem:[#allocation8 + $0xb8] sm:$0xff] }
 0x345   : > { %4154 = vmatpush3.bf16.msra.mxu1 %v4153_v0  ;;  %4124 = vmatprep.subr.bf16.mxu0 %v4123_v16  ;;  %v2144_v0 = vld [vmem:[#allocation6 + $0x4b8] sm:$0xff]  ;;  %v2278_v11 = vld [vmem:[#allocation8 + $0x48] sm:$0xff] }
 0x346   : > { %4156 = vmatprep.subr.bf16.mxu1 %v4155_v17  ;;  %v4175_v14 = vpack.c.bf16 %v2144_v0, %v2143_v13  ;;  %v2128_v16 = vld [vmem:[#allocation6 + $0x438] sm:$0xff]  ;;  %v2145_v17 = vld [vmem:[#allocation6 + $0x4c0] sm:$0xff]  ;;  %v2279_v0 = vld [vmem:[#allocation8 + $0x50] sm:$0xff] }
 0x347   : > { %v4177_v20 = vpack.c.bf16 %v2128_v16, %v2127_v15  ;;  %v4179_v9 = vpack.c.bf16 %v2146_v18, %v2145_v17  ;;  %v2276_v3 = vld [vmem:[#allocation8 + $0x38] sm:$0xff]  ;;  %v2387_v15 = vld [vmem:[#allocation8 + $0xe0] sm:$0xff]  ;;  %v2388_v16 = vld [vmem:[#allocation8 + $0xe8] sm:$0xff] }
 0x348   : > { %4126 = vmatpush3.bf16.msra.mxu0 %v4125_v24  ;;  %v2148_v24 = vld [vmem:[#allocation6 + $0x4d8] sm:$0xff]  ;;  %v4251_v18 = vpack.c.bf16 %v2388_v16, %v2387_v15  ;;  %v2481_v29 = vld [vmem:[#allocation8 + $0x108] sm:$0xff]  ;;  %v2243_v15 = vpop.permute.xlu1 %2242 }
 0x349   : > { %4158 = vmatpush3.bf16.msra.mxu1 %v4157_v25  ;;  %4128 = vmatprep.subr.bf16.mxu0 %v4127_v27  ;;  %v4181_v25 = vpack.c.bf16 %v2130_v22, %v2129_v21  ;;  %v4183_v26 = vpack.c.bf16 %v2148_v24, %v2147_v23  ;;  %v2131_v27 = vld [vmem:[#allocation6 + $0x450] sm:$0xff]  ;;  %v2386_v13 = vld [vmem:[#allocation8 + $0xd8] sm:$0xff] }
 0x34a   : > { %4160 = vmatprep.subr.bf16.mxu1 %v4159_v28  ;;  %v2132_v28 = vld [vmem:[#allocation6 + $0x458] sm:$0xff]  ;;  %v2389_v21 = vld [vmem:[#allocation8 + $0xf0] sm:$0xff] }
 0x34b   : > { %v4185_v36 = vpack.c.bf16 %v2132_v28, %v2131_v27  ;;  %v2390_v23 = vld [vmem:[#allocation8 + $0xf8] sm:$0xff]  ;;  %v2283_v24 = vld [vmem:[#allocation8 + $0x70] sm:$0xff]  ;;  %v2480_v28 = vld [vmem:[#allocation8 + $0x100] sm:$0xff] }
 0x34c   : > { %4130 = vmatpush3.bf16.msra.mxu0 %v4129_v42  ;;  %v2152_v42 = vld [vmem:[#allocation6 + $0x4f8] sm:$0xff]  ;;  %v5109_v35 = vpack.c.bf16 %v2481_v29, %v2480_v28  ;;  %v2482_v28 = vld [vmem:[#allocation8 + $0x110] sm:$0xff] }
 0x34d   : > { %4162 = vmatpush3.bf16.msra.mxu1 %v4161_v19  ;;  %4164 = vmatprep.subr.bf16.mxu0 %v4163_v44  ;;  %v4189_v19 = vpack.c.bf16 %v2134_v39, %v2133_v38  ;;  %v4191_v41 = vpack.c.bf16 %v2152_v42, %v2151_v40  ;;  %v2136_v44 = vld [vmem:[#allocation6 + $0x478] sm:$0xff] }
 0x34e   : > { %v4193_v45 = vpack.c.bf16 %v2136_v44, %v2135_v43  ;;  %4228 = vmatprep.subr.bf16.mxu1 %v4227_v51  ;;  %v2483_v29 = vld [vmem:[#allocation8 + $0x118] sm:$0xff] }
 0x34f   : > { %1971 = vmatmul.mubr.f32.vlgmr.msra.gmra.mrb[10].mxu0 %v1894_v58 }
 0x350   : > { %2104 = vmatmul.mubr.f32.vlgmr.msra.gmra.mrb[8].mxu1 %v2027_v59  ;;  %1975 = vmatprep.mubr.f32.mxu0 %v1901_v1  ;;  %v2273_v59 = vld [vmem:[#allocation8 + $0x20] sm:$0xff]  ;;  %v4239_v1 = vpack.c.bf16 %v2382_v63, %v2381_v62 }
 0x351   : > { %2108 = vmatprep.mubr.f32.mxu1 %v2034_v2  ;;  %4166 = vmatpush3.bf16.msra.mxu0 %v4165_v56  ;;  %v2272_v56 = vld [vmem:[#allocation8 + $0x18] sm:$0xff]  ;;  %v4203_v61 = vpack.c.bf16 %v2274_v60, %v2273_v59  ;;  %v2275_v2 = vld [vmem:[#allocation8 + $0x30] sm:$0xff] }
 0x352   : > { %4168 = vmatprep.subr.bf16.mxu0 %v4167_v57  ;;  %4230 = vmatpush3.bf16.msra.mxu1 %v4227_v51  ;;  %v4199_v57 = vpack.c.bf16 %v2272_v56, %v2271_v55  ;;  %v4207_v4 = vpack.c.bf16 %v2276_v3, %v2275_v2 }
 0x353   : > { %1976 = vmatmul.mubr.f32.gmra.mrb[12].mxu0 %v1899_v6  ;;  %4232 = vmatprep.subr.bf16.mxu1 %v4231_v54  ;;  %v2384_v6 = vld [vmem:[#allocation8 + $0xc8] sm:$0xff] }
 0x354   : > { %2109 = vmatmul.mubr.f32.gmra.mrb[10].mxu1 %v2032_v7  ;;  %2217 = vmatprep.mubr.f32.mxu0 %v2117_v33  ;;  %v2385_v33 = vld [vmem:[#allocation8 + $0xd0] sm:$0xff] }
 0x355   : > { %4170 = vmatpush3.bf16.msra.mxu0 %v4169_v5  ;;  %v2383_v5 = vld [vmem:[#allocation8 + $0xc0] sm:$0xff] }
 0x356   : > { %4172 = vmatprep.subr.bf16.mxu0 %v4171_v8  ;;  %4234 = vmatpush3.bf16.msra.mxu1 %v4231_v54  ;;  %v4243_v7 = vpack.c.bf16 %v2384_v6, %v2383_v5  ;;  %v2277_v8 = vld [vmem:[#allocation8 + $0x40] sm:$0xff] }
 0x357   : > { %v4211_v12 = vpack.c.bf16 %v2278_v11, %v2277_v8 }
 0x359   : > { %4174 = vmatpush3.bf16.msra.mxu0 %v4173_v34  ;;  %v4247_v34 = vpack.c.bf16 %v2386_v13, %v2385_v33  ;;  %v2238_v33 = vpop.permute.xlu0 %2237 }
 0x35a   : > { %4176 = vmatprep.subr.bf16.mxu0 %v4175_v14  ;;  %v2280_v14 = vld [vmem:[#allocation8 + $0x58] sm:$0xff] }
 0x35b   : > { %v4215_v17 = vpack.c.bf16 %v2280_v14, %v2279_v0 }
 0x35d   : > { %4178 = vmatpush3.bf16.msra.mxu0 %v4177_v20  ;;  %v2281_v20 = vld [vmem:[#allocation8 + $0x60] sm:$0xff] }
 0x35e   : > { %4180 = vmatprep.subr.bf16.mxu0 %v4179_v9  ;;  %v2282_v9 = vld [vmem:[#allocation8 + $0x68] sm:$0xff] }
 0x35f   : > { %v4219_v22 = vpack.c.bf16 %v2282_v9, %v2281_v20 }
 0x361   : > { %4182 = vmatpush3.bf16.msra.mxu0 %v4181_v25  ;;  %v2284_v25 = vld [vmem:[#allocation8 + $0x78] sm:$0xff] }
 0x362   : > { %4184 = vmatprep.subr.bf16.mxu0 %v4183_v26  ;;  %v4255_v26 = vpack.c.bf16 %v2390_v23, %v2389_v21  ;;  %v4223_v27 = vpack.c.bf16 %v2284_v25, %v2283_v24 }
 0x365   : > { %4186 = vmatpush3.bf16.msra.mxu0 %v4185_v36  ;;  %v2985_v36 = vld [vmem:[%s5151_s5 + $0x4] sm:$0x3] }
 0x366   : > { %4188 = vmatprep.subr.bf16.mxu0 %v4187_v37  ;;  %v1580_v39 = vrot.slane %v2985_v36, %v5002_v10 }
 0x369   : > { %4190 = vmatpush3.bf16.msra.mxu0 %v4189_v19 }
 0x36a   : > { %4192 = vmatprep.subr.bf16.mxu0 %v4191_v41 }
 0x36d   : > { %4194 = vmatpush3.bf16.msra.mxu0 %v4193_v45 }
 0x36e   : > { %4196 = vmatprep.subr.bf16.mxu0 %v4195_v53 }
 0x370   : > { %2218 = vmatmul.mubr.f32.vlgmr.msra.gmra.mrb[14].mxu0 %v2116_v46 }
 0x371   : > { %2222 = vmatprep.mubr.f32.mxu0 %v5055_v32  ;;  %4198 = vmatpush3.bf16.msra.mxu0 %v4195_v53  ;;  %v2380_v32 = vld [vmem:[#allocation8 + $0xa8] sm:$0xff] }
 0x372   : > { %4200 = vmatprep.subr.bf16.mxu0 %v4199_v57 }
 0x374   : > { %2223 = vmatmul.mubr.f32.gmra.mrb[16].mxu0 %v5052_v31  ;;  %v2379_v31 = vld [vmem:[#allocation8 + $0xa0] sm:$0xff] }
 0x375   : > { %4202 = vmatpush3.bf16.msra.mxu0 %v4199_v57  ;;  %v4235_v58 = vpack.c.bf16 %v2380_v32, %v2379_v31 }
 0x376   : > { %4204 = vmatprep.subr.bf16.mxu0 %v4203_v61 }
 0x377   : > { %4236 = vmatprep.subr.bf16.mxu1 %v4235_v58 }
 0x378   : > { %4238 = vmatpush3.bf16.msra.mxu1 %v4235_v58 }
 0x379   : > { %4206 = vmatpush3.bf16.msra.mxu0 %v4203_v61  ;;  %4240 = vmatprep.subr.bf16.mxu1 %v4239_v1 }
 0x37a   : > { %4208 = vmatprep.subr.bf16.mxu0 %v4207_v4 }
 0x37c   : > { %4242 = vmatpush3.bf16.msra.mxu1 %v4239_v1 }
 0x37d   : > { %4210 = vmatpush3.bf16.msra.mxu0 %v4207_v4  ;;  %4244 = vmatprep.subr.bf16.mxu1 %v4243_v7 }
 0x37e   : > { %4212 = vmatprep.subr.bf16.mxu0 %v4211_v12 }
 0x380   : > { %4246 = vmatpush3.bf16.msra.mxu1 %v4243_v7 }
 0x381   : > { %4214 = vmatpush3.bf16.msra.mxu0 %v4211_v12  ;;  %4248 = vmatprep.subr.bf16.mxu1 %v4247_v34 }
 0x382   : > { %4216 = vmatprep.subr.bf16.mxu0 %v4215_v17 }
 0x384   : > { %4250 = vmatpush3.bf16.msra.mxu1 %v4247_v34 }
 0x385   : > { %4218 = vmatpush3.bf16.msra.mxu0 %v4215_v17  ;;  %4252 = vmatprep.subr.bf16.mxu1 %v4251_v18 }
 0x386   : > { %4220 = vmatprep.subr.bf16.mxu0 %v4219_v22 }
 0x388   : > { %4254 = vmatpush3.bf16.msra.mxu1 %v4251_v18 }
 0x389   : > { %4222 = vmatpush3.bf16.msra.mxu0 %v4219_v22  ;;  %4256 = vmatprep.subr.bf16.mxu1 %v4255_v26 }
 0x38a   : > { %4224 = vmatprep.subr.bf16.mxu0 %v4223_v27 }
 0x38c   : > { %4258 = vmatpush3.bf16.msra.mxu1 %v4255_v26 }
 0x38d   : > { %4226 = vmatpush3.bf16.msra.mxu0 %v4223_v27  ;;  %4260 = vmatprep.subr.bf16.mxu1 %v5109_v35 }
 0x402   : > { %v3117_v37 = vpop.f32.mrb[6].mxu0 }
 0x403   : > { %v3155_v38 = vpop.f32.mrb[4].mxu1  ;;  %v3118_v40 = vpop.f32.mrb[7].mxu0 }
 0x404   : > { %v3156_v42 = vpop.f32.mrb[5].mxu1  ;;  %v3119_v19 = vadd.f32 %v3118_v40, %v3117_v37 }
 0x405   : > { %v3157_v41 = vadd.f32 %v3156_v42, %v3155_v38 }
 0x406   : > { %v1715_v43 = vadd.f32 %v3119_v19, %v1580_v39  ;;  %v3120_v44 = vpop.f32.mrb[8].mxu0  ;;  %v4263_v19 = vpack.c.bf16 %v2483_v29, %v2482_v28  ;;  %v2691_v28 = vld [vmem:[#allocation8 + $0x208] sm:$0xff] }
 0x407   : > { %v3158_v45 = vpop.f32.mrb[6].mxu1  ;;  %v3121_v46 = vpop.f32.mrb[9].mxu0 }
 0x408   : > { %v3159_v48 = vpop.f32.mrb[7].mxu1  ;;  %v1848_v49 = vadd.f32 %v3157_v41, %v1715_v43  ;;  %v3122_v50 = vadd.f32 %v3121_v46, %v3120_v44  ;;  %v2484_v44 = vld [vmem:[#allocation8 + $0x120] sm:$0xff] }
 0x409   : > { %v3160_v51 = vadd.f32 %v3159_v48, %v3158_v45  ;;  %v2485_v45 = vld [vmem:[#allocation8 + $0x128] sm:$0xff] }
 0x40a   : > { %v1716_v52 = vadd.f32 %v3122_v50, %v1580_v39  ;;  %v4267_v48 = vpack.c.bf16 %v2485_v45, %v2484_v44  ;;  %v2487_v50 = vld [vmem:[#allocation8 + $0x138] sm:$0xff]  ;;  %v2696_v45 = vld [vmem:[#allocation8 + $0x230] sm:$0xff] }
 0x40c   : > { %v1849_v53 = vadd.f32 %v3160_v51, %v1716_v52  ;;  %v2488_v52 = vld [vmem:[#allocation8 + $0x140] sm:$0xff] }
 0x422   : > { %v3193_v30 = vpop.f32.mrb[10].mxu0 }
 0x423   : > { %v3231_v47 = vpop.f32.mrb[8].mxu1  ;;  %v3194_v54 = vpop.f32.mrb[11].mxu0 }
 0x424   : > { %v3232_v55 = vpop.f32.mrb[9].mxu1  ;;  %v3195_v56 = vadd.f32 %v3194_v54, %v3193_v30  ;;  %v2491_v54 = vld [vmem:[#allocation8 + $0x158] sm:$0xff] }
 0x425   : > { %v3233_v57 = vadd.f32 %v3232_v55, %v3231_v47  ;;  %v2490_v47 = vld [vmem:[#allocation8 + $0x150] sm:$0xff] }
 0x426   : > { %v1981_v31 = vadd.f32 %v3195_v56, %v1848_v49  ;;  %v3196_v32 = vpop.f32.mrb[12].mxu0  ;;  %v2486_v49 = vld [vmem:[#allocation8 + $0x130] sm:$0xff]  ;;  %v4279_v55 = vpack.c.bf16 %v2491_v54, %v2490_v47  ;;  %v2492_v56 = vld [vmem:[#allocation8 + $0x160] sm:$0xff]  ;;  %v2703_v54 = vld [vmem:[#allocation8 + $0x268] sm:$0xff] }
 0x427   : > { %v3234_v58 = vpop.f32.mrb[10].mxu1  ;;  %v3197_v59 = vpop.f32.mrb[13].mxu0  ;;  %v4271_v51 = vpack.c.bf16 %v2487_v50, %v2486_v49  ;;  %v2698_v49 = vld [vmem:[#allocation8 + $0x240] sm:$0xff]  ;;  %v2699_v50 = vld [vmem:[#allocation8 + $0x248] sm:$0xff] }
 0x428   : > { %v3235_v60 = vpop.f32.mrb[11].mxu1  ;;  %v2114_v61 = vadd.f32 %v3233_v57, %v1981_v31  ;;  %v3198_v62 = vadd.f32 %v3197_v59, %v3196_v32  ;;  %v2494_v31 = vld [vmem:[#allocation8 + $0x170] sm:$0xff]  ;;  %v2495_v32 = vld [vmem:[#allocation8 + $0x178] sm:$0xff]  ;;  %v2585_v59 = vld [vmem:[#allocation8 + $0x180] sm:$0xff] }
 0x429   : > { %v3236_v63 = vadd.f32 %v3235_v60, %v3234_v58  ;;  %v4287_v58 = vpack.c.bf16 %v2495_v32, %v2494_v31  ;;  %v2586_v60 = vld [vmem:[#allocation8 + $0x188] sm:$0xff]  ;;  %v2702_v47 = vld [vmem:[#allocation8 + $0x260] sm:$0xff] }
 0x42a   : > { %v1982_v1 = vadd.f32 %v3198_v62, %v1849_v53  ;;  %v2489_v53 = vld [vmem:[#allocation8 + $0x148] sm:$0xff] }
 0x42b   : > { %v4275_v30 = vpack.c.bf16 %v2489_v53, %v2488_v52  ;;  %v2700_v52 = vld [vmem:[#allocation8 + $0x250] sm:$0xff]  ;;  %v2701_v53 = vld [vmem:[#allocation8 + $0x258] sm:$0xff] }
 0x42c   : > { %v2115_v2 = vadd.f32 %v3236_v63, %v1982_v1  ;;  %v4291_v63 = vpack.c.bf16 %v2586_v60, %v2585_v59 }
 0x443   : > { %v3269_v3 = vpop.f32.mrb[14].mxu0 }
 0x444   : > { %v3270_v4 = vpop.f32.mrb[15].mxu0 }
 0x445   : > { %v3271_v5 = vadd.f32 %v3270_v4, %v3269_v3  ;;  %v2588_v3 = vld [vmem:[#allocation8 + $0x198] sm:$0xff] }
 0x447   : > { %v2228_v6 = vadd.f32 %v3271_v5, %v2114_v61  ;;  %v3272_v7 = vpop.f32.mrb[16].mxu0 }
 0x448   : > { %v3273_v8 = vpop.f32.mrb[17].mxu0 }
 0x449   : > { %v2230_v11 = vmax.f32 %v2228_v6, 0.0  ;;  %v3274_v12 = vadd.f32 %v3273_v8, %v3272_v7  ;;  %v2589_v8 = vld [vmem:[#allocation8 + $0x1a0] sm:$0xff] }
 0x44b   : > { %v2245_v13 = vmul.f32 %v2238_v33, %v2230_v11  ;;  %v2229_v0 = vadd.f32 %v3274_v12, %v2115_v2  ;;  %v2587_v2 = vld [vmem:[#allocation8 + $0x190] sm:$0xff]  ;;  %v2590_v11 = vld [vmem:[#allocation8 + $0x1a8] sm:$0xff] }
 0x44c   : > { %v4295_v6 = vpack.c.bf16 %v2588_v3, %v2587_v2  ;;  %v4299_v33 = vpack.c.bf16 %v2590_v11, %v2589_v8 }
 0x44d   : > { %v2249_v34 = vrot.slane %v2245_v13, 4  ;;  %v2231_v14 = vmax.f32 %v2229_v0, 0.0  ;;  %v2591_v13 = vld [vmem:[#allocation8 + $0x1b0] sm:$0xff]  ;;  %v2592_v0 = vld [vmem:[#allocation8 + $0x1b8] sm:$0xff] }
 0x44f   : > { %2255 = vst [vmem:[#allocation3] sm:$0xf0] %v2249_v34  ;;  %v2246_v16 = vmul.f32 %v2243_v15, %v2231_v14  ;;  %v2593_v14 = vld [vmem:[#allocation8 + $0x1c0] sm:$0xff]  ;;  %v2594_v15 = vld [vmem:[#allocation8 + $0x1c8] sm:$0xff] }
 0x451   : > { %v2250_v17 = vrot.slane %v2246_v16, 4  ;;  %v4307_v16 = vpack.c.bf16 %v2594_v15, %v2593_v14 }
 0x453   : > { %v5117_v18 = vsel %vm339_vm0, %v2249_v34, %v2250_v17  ;;  %2257 = vst [vmem:[#allocation3 + $0x20] sm:$0xf] %v2250_v17  ;;  %v4303_v34 = vpack.c.bf16 %v2592_v0, %v2591_v13  ;;  %v2595_v17 = vld [vmem:[#allocation8 + $0x1d0] sm:$0xff] }
 0x454   : > { %v2289_v22 = vrot.slane %v5117_v18, 4  ;;  %v2394_v24 = vrot.slane %v5117_v18, 3  ;;  %v2499_v42 = vrot.slane %v5117_v18, 2  ;;  %v2604_v5 = vrot.slane %v5117_v18, 1 }
 0x456   : > { %v2266_v20 = vld [vmem:[#allocation3] sm:$0xf0] }
 0x457   : > { %v2372_v9 = vld [vmem:[#allocation3] sm:$0xf8]  ;;  %v2288_v21 = vrot.slane %v2266_v20, 4  ;;  %v2596_v20 = vld [vmem:[#allocation8 + $0x1d8] sm:$0xff] }
 0x458   : > { %v2393_v23 = vrot.slane %v2372_v9, 3  ;;  %v2477_v25 = vld [vmem:[#allocation3] sm:$0xfc]  ;;  %v4311_v9 = vpack.c.bf16 %v2596_v20, %v2595_v17 }
 0x459   : > { %v2290_v26 = vsel %vm339_vm0, %v2288_v21, %v2289_v22  ;;  %v2498_v38 = vrot.slane %v2477_v25, 2  ;;  %v2582_v62 = vld [vmem:[#allocation3] sm:$0xfe]  ;;  %v2597_v21 = vld [vmem:[#allocation8 + $0x1e0] sm:$0xff]  ;;  %v2600_v25 = vld [vmem:[#allocation8 + $0x1f8] sm:$0xff] }
 0x45a   : > { %v2395_v27 = vsel %vm1758_vm4, %v2393_v23, %v2394_v24  ;;  %3572 = vmatprep.mubr.f32.mxu0 %v2290_v26  ;;  %v2268_v36 = vld [vmem:[#allocation3 + $0x20] sm:$0xf]  ;;  %v2603_v4 = vrot.slane %v2582_v62, 1 }
 0x45b   : > { %3607 = vmatprep.mubr.f32.mxu1 %v2395_v27  ;;  %v2373_v37 = vld [vmem:[#allocation3 + $0x20] sm:$0x7]  ;;  %v2291_v39 = vrot.slane %v2268_v36, 4  ;;  %v2500_v46 = vsel %vm1891_vm5, %v2498_v38, %v2499_v42  ;;  %v2690_v27 = vld [vmem:[#allocation8 + $0x200] sm:$0xff] }
 0x45c   : > { %v2396_v40 = vrot.slane %v2373_v37, 3  ;;  %v2478_v61 = vld [vmem:[#allocation3 + $0x20] sm:$0x3]  ;;  %v2605_v12 = vsel %vm2024_vm6, %v2603_v4, %v2604_v5  ;;  %v4323_v36 = vpack.c.bf16 %v2691_v28, %v2690_v27  ;;  %v2796_v4 = vpop.permute.xlu1 %2795 }
 0x45d   : > { %v2292_v41 = vsel %vm339_vm0, %v2289_v22, %v2291_v39  ;;  %v2501_v1 = vrot.slane %v2478_v61, 2  ;;  %v2598_v22 = vld [vmem:[#allocation8 + $0x1e8] sm:$0xff]  ;;  %v2583_v29 = vld [vmem:[#allocation3 + $0x20] sm:$0x1]  ;;  %v2693_v39 = vld [vmem:[#allocation8 + $0x218] sm:$0xff] }
 0x45e   : > { %v2397_v43 = vsel %vm1758_vm4, %v2394_v24, %v2396_v40  ;;  %3573 = vmatmul.mubr.f32.vlgmr.msra.gmra.mrb[18].mxu0 %v2292_v41  ;;  %v4315_v23 = vpack.c.bf16 %v2598_v22, %v2597_v21  ;;  %v2599_v24 = vld [vmem:[#allocation8 + $0x1f0] sm:$0xff]  ;;  %v2606_v37 = vrot.slane %v2583_v29, 1  ;;  %v2695_v41 = vld [vmem:[#allocation8 + $0x228] sm:$0xff] }
 0x45f   : > { %3608 = vmatmul.mubr.f32.vlgmr.msra.gmra.mrb[12].mxu1 %v2397_v43  ;;  %v2502_v7 = vsel %vm1891_vm5, %v2499_v42, %v2501_v1  ;;  %v4319_v26 = vpack.c.bf16 %v2600_v25, %v2599_v24  ;;  %v2692_v38 = vld [vmem:[#allocation8 + $0x210] sm:$0xff] }
 0x460   : > { %4262 = vmatpush3.bf16.msra.mxu1 %v5109_v35  ;;  %3642 = vmatprep.mubr.f32.mxu1 %v2500_v46  ;;  %v2493_v35 = vld [vmem:[#allocation8 + $0x168] sm:$0xff]  ;;  %v4327_v40 = vpack.c.bf16 %v2693_v39, %v2692_v38  ;;  %v2607_v42 = vsel %vm2024_vm6, %v2604_v5, %v2606_v37  ;;  %v2687_v43 = vld [vmem:[#allocation3] sm:$0xff]  ;;  %v2697_v46 = vld [vmem:[#allocation8 + $0x238] sm:$0xff] }
 0x461   : > { %4264 = vmatprep.subr.bf16.mxu1 %v4263_v19  ;;  %v4283_v57 = vpack.c.bf16 %v2493_v35, %v2492_v56  ;;  %v2704_v56 = vld [vmem:[#allocation8 + $0x270] sm:$0xff]  ;;  %v2705_v35 = vld [vmem:[#allocation8 + $0x278] sm:$0xff] }
 0x464   : > { %4266 = vmatpush3.bf16.msra.mxu1 %v4263_v19  ;;  %v2694_v19 = vld [vmem:[#allocation8 + $0x220] sm:$0xff] }
 0x465   : > { %4268 = vmatprep.subr.bf16.mxu1 %v4267_v48  ;;  %v4331_v44 = vpack.c.bf16 %v2695_v41, %v2694_v19 }
 0x468   : > { %4270 = vmatpush3.bf16.msra.mxu1 %v4267_v48  ;;  %v4335_v48 = vpack.c.bf16 %v2697_v46, %v2696_v45 }
 0x469   : > { %4272 = vmatprep.subr.bf16.mxu1 %v4271_v51 }
 0x46c   : > { %4274 = vmatpush3.bf16.msra.mxu1 %v4271_v51  ;;  %v4339_v51 = vpack.c.bf16 %v2699_v50, %v2698_v49 }
 0x46d   : > { %4276 = vmatprep.subr.bf16.mxu1 %v4275_v30 }
 0x470   : > { %4278 = vmatpush3.bf16.msra.mxu1 %v4275_v30  ;;  %v4343_v30 = vpack.c.bf16 %v2701_v53, %v2700_v52 }
 0x471   : > { %4280 = vmatprep.subr.bf16.mxu1 %v4279_v55 }
 0x474   : > { %4282 = vmatpush3.bf16.msra.mxu1 %v4279_v55  ;;  %v4347_v55 = vpack.c.bf16 %v2703_v54, %v2702_v47 }
 0x475   : > { %4284 = vmatprep.subr.bf16.mxu1 %v4283_v57 }
 0x478   : > { %4286 = vmatpush3.bf16.msra.mxu1 %v4283_v57  ;;  %v4351_v57 = vpack.c.bf16 %v2705_v35, %v2704_v56 }
 0x479   : > { %4288 = vmatprep.subr.bf16.mxu1 %v4287_v58 }
 0x47c   : > { %4290 = vmatpush3.bf16.msra.mxu1 %v4287_v58  ;;  %v2988_v58 = vld [vmem:[%s5151_s5 + $0x6] sm:$0x3] }
 0x47d   : > { %4292 = vmatprep.subr.bf16.mxu1 %v4291_v63  ;;  %v2264_v59 = vrot.slane %v2988_v58, %v5002_v10 }
 0x47f   : > { %3643 = vmatmul.mubr.f32.vlgmr.msra.gmra.mrb[12].mxu1 %v2502_v7 }
 0x480   : > { %4294 = vmatpush3.bf16.msra.mxu1 %v4291_v63  ;;  %3677 = vmatprep.mubr.f32.mxu1 %v2605_v12 }
 0x481   : > { %4296 = vmatprep.subr.bf16.mxu1 %v4295_v6 }
 0x484   : > { %4298 = vmatpush3.bf16.msra.mxu1 %v4295_v6  ;;  %v2791_v6 = vpop.permute.xlu0 %2790 }
 0x485   : > { %4300 = vmatprep.subr.bf16.mxu1 %v4299_v33 }
 0x488   : > { %4302 = vmatpush3.bf16.msra.mxu1 %v4299_v33 }
 0x489   : > { %4304 = vmatprep.subr.bf16.mxu1 %v4303_v34 }
 0x48c   : > { %4306 = vmatpush3.bf16.msra.mxu1 %v4303_v34 }
 0x48d   : > { %4308 = vmatprep.subr.bf16.mxu1 %v4307_v16 }
 0x490   : > { %4310 = vmatpush3.bf16.msra.mxu1 %v4307_v16 }
 0x491   : > { %4312 = vmatprep.subr.bf16.mxu1 %v4311_v9 }
 0x494   : > { %4314 = vmatpush3.bf16.msra.mxu1 %v4311_v9 }
 0x495   : > { %4316 = vmatprep.subr.bf16.mxu1 %v4315_v23 }
 0x498   : > { %4318 = vmatpush3.bf16.msra.mxu1 %v4315_v23 }
 0x499   : > { %4320 = vmatprep.subr.bf16.mxu1 %v4319_v26 }
 0x49c   : > { %4322 = vmatpush3.bf16.msra.mxu1 %v4319_v26 }
 0x49d   : > { %4324 = vmatprep.subr.bf16.mxu1 %v4323_v36 }
 0x49f   : > { %3678 = vmatmul.mubr.f32.vlgmr.msra.gmra.mrb[12].mxu1 %v2607_v42 }
 0x4a0   : > { %4326 = vmatpush3.bf16.msra.mxu1 %v4323_v36  ;;  %3712 = vmatprep.mubr.f32.mxu1 %v2687_v43 }
 0x4a1   : > { %4328 = vmatprep.subr.bf16.mxu1 %v4327_v40 }
 0x4a4   : > { %4330 = vmatpush3.bf16.msra.mxu1 %v4327_v40 }
 0x4a5   : > { %4332 = vmatprep.subr.bf16.mxu1 %v4331_v44 }
 0x4a8   : > { %4334 = vmatpush3.bf16.msra.mxu1 %v4331_v44 }
 0x4a9   : > { %4336 = vmatprep.subr.bf16.mxu1 %v4335_v48 }
 0x4ac   : > { %4338 = vmatpush3.bf16.msra.mxu1 %v4335_v48 }
 0x4ad   : > { %4340 = vmatprep.subr.bf16.mxu1 %v4339_v51 }
 0x4b0   : > { %4342 = vmatpush3.bf16.msra.mxu1 %v4339_v51 }
 0x4b1   : > { %4344 = vmatprep.subr.bf16.mxu1 %v4343_v30 }
 0x4b4   : > { %4346 = vmatpush3.bf16.msra.mxu1 %v4343_v30 }
 0x4b5   : > { %4348 = vmatprep.subr.bf16.mxu1 %v4347_v55 }
 0x4b8   : > { %4350 = vmatpush3.bf16.msra.mxu1 %v4347_v55 }
 0x4b9   : > { %4352 = vmatprep.subr.bf16.mxu1 %v4351_v57 }
 0x4bc   : > { %4354 = vmatpush3.bf16.msra.mxu1 %v4351_v57 }
 0x4bf   : > { %3713 = vmatmul.mubr.f32.vlgmr.msra.gmra.mrb[12].mxu1 %v5117_v18 }
 0x531   : > { %v3574_v31 = vpop.f32.mrb[18].mxu0 }
 0x532   : > { %v2361_v32 = vpop.f32.mrb[19].mxu0  ;;  %v2371_v60 = vadd.f32 %v3574_v31, %v2264_v59 }
 0x533   : > { %v2370_v61 = vadd.f32 %v2361_v32, %v2264_v59 }
 0x592   : > { %v3714_v62 = vpop.f32.mrb[12].mxu1 }
 0x593   : > { %v4366_v63 = vadd.f32 %v3714_v62, %v2371_v60  ;;  %v2772_v1 = vpop.f32.mrb[13].mxu1 }
 0x594   : > { %v4368_v2 = vadd.f32 %v2772_v1, %v2370_v61 }
 0x595   : > { %v2784_v3 = vmax.f32 %v4366_v63, 0.0 }
 0x596   : > { %v2783_v5 = vmax.f32 %v4368_v2, 0.0 }
 0x597   : > { %v2799_v18 = vmul.f32 %v2796_v4, %v2784_v3 }
 0x598   : > { %v2798_v7 = vmul.f32 %v2791_v6, %v2783_v5 }
 0x599   : > { %v2803_v8 = vrot.slane %v2799_v18, 4 }
 0x59a   : > { %v2802_v11 = vrot.slane %v2798_v7, 4 }
 0x59b   : > { %2810 = vst [vmem:[#allocation2 + $0x20] sm:$0xf] %v2803_v8 }
 0x59c   : > { %v2804_v10 = vsel %vm339_vm0, %v2802_v11, %v2803_v8  ;;  %2808 = vst [vmem:[#allocation2] sm:$0xf0] %v2802_v11 }
 0x59d   : > { %2815 = vst [vmem:[%s322_s19 + $0x4] sm:$0xff] %v2804_v10 }
 0x5a2   : > { %v2813_v12 = vld [vmem:[#allocation2 + $0x20] sm:$0xf] }
 0x5a3   : > { %2816 = vst [vmem:[%s322_s19 + $0xc] sm:$0xf] %v2813_v12  ;;  %v2811_v33 = vld [vmem:[#allocation2] sm:$0xf0] }
 0x5a4   : > { %2814 = vst [vmem:[%s322_s19 - $0x4] sm:$0xf0] %v2811_v33 }
 0x5a5 PF: > { %s19_s24 = sadd.s32 1, %s4541_s24  }
 0x5a6   : > { %p16_p5 = scmp.ge.s32.totalorder %s19_s24, 4  }
 0x5a8   :  { %18 = sbr.rel (!%p16_p5) target bundleno = 2 (0x2), region = 113 }
 0x5af   :  { %2838 = vsyncpa [#allocation5], 1 }
 0x5b0   :  { %2840 = vsyncpa [#allocation5 + $0x1], 1 }
 0x5b1   :  { %2841 = vsyncpa [#allocation7], 1 }

</bundles_post_ra>
